<compile_context>
chip_gen: v5e
topology: v5e:2x2
jax: 0.10.0
libtpu: 0.0.40
codegen_flags: <defaults>
</compile_context>

<pallas_src>
import functools

import jax
import jax.numpy as jnp
from jax import lax
from jax.experimental import pallas as pl
from jax.experimental.pallas import tpu as pltpu

_LANE = 128
_SUBLANE = 8


def _round_up(x, m):
    return (x + m - 1) // m * m


def _tpru_recurrence_kernel(seq_ref, utw_ref, wx_ref, m_ref, rt_ref, out_ref,
                            *, den_col, unroll):
    """Serial TPRU recurrence (batch-major, lane-dense, zero-padded).

    seq_ref : (T, Bblk, 1)   padded input sequence, batch on sublanes
    utw_ref : (1, Np)        (U.T @ W)[:, 0], zero padded
    wx_ref  : (1, dp)        Wx[:, 0], zero padded
    m_ref   : (dp, Np + dp)  [U | Wb.T], zero padded (fused bt-dependent matmul)
    rt_ref  : (Np, dp)       R.T with a ones column at lane `den_col`
                             (folds the denominator sum into the matmul)
    out_ref : (Bblk, dp)     final hidden state
    """
    T = seq_ref.shape[0]
    Bblk = seq_ref.shape[1]
    Np = utw_ref.shape[-1]
    dp = wx_ref.shape[-1]

    def step(t, bt):
        x = seq_ref[t]                                            # (Bblk, 1)
        # Fused bt-dependent matmuls: one MXU push for [bt @ U | bt @ Wb.T].
        # Weights are re-read from VMEM every step on purpose: vld slots are
        # idle, and hoisting them would pin ~48 vregs and spill the chain.
        stk = jnp.dot(bt, m_ref[...], preferred_element_type=jnp.float32)
        # xt-only terms recomputed from their rank-1 structure (2 vmul + vmax).
        fxt = jnp.maximum(x * utw_ref[...], 0.0)                  # relu(UTW * xt)
        s = jnp.maximum(stk[:, :Np], 0.0) + fxt                   # + relu(bt @ U)
        num = s * s                                               # (Bblk, Np)
        # Second MXU push: [num @ R.T | sum_N(num)] via the ones column in RT.
        res = jnp.dot(num, rt_ref[...], preferred_element_type=jnp.float32)
        den = res[:, den_col:den_col + 1] + 1e-6                  # (Bblk, 1)
        # Approx reciprocal on the EUP slot + one Newton step (~f32 accuracy).
        r = pl.reciprocal(den, approx=True)
        r = r * (2.0 - den * r)
        # Row-scalar scale == (num / den) @ R.T (matmul is row-linear).  The
        # denominator lane picks up ~1 but lives in the zero-padded region of
        # bt (M row `den_col` is zero) and is sliced off outside the kernel.
        b = res * r                                               # (Bblk, dp)
        z = stk[:, Np:] + x * wx_ref[...]                         # (Bblk, dp)
        gt = 0.5 * jnp.tanh(0.5 * z) + 0.5                        # sigmoid, 1 EUP op
        return bt + gt * (jnp.tanh(b) - bt)                       # gate blend, 1 mul

    bt0 = jnp.zeros((Bblk, dp), jnp.float32)
    bt = lax.fori_loop(0, T, step, bt0, unroll=unroll)
    out_ref[...] = bt                                             # single lane-dense store


def tpru_encoder_forward(sequence_bt, Wu, Wr, Wb, W, Wx, V, *, batch_block=None):
    """sequence_bt: (B, T) -> (B, d) float32 (matches the PyTorch forward)."""
    assert W.shape[1] == 1 and Wx.shape[1] == 1, (
        "original forward only type-checks for d_prime == 1")
    B, T = sequence_bt.shape
    d = Wu.shape[0]
    N = V.shape[1]
    Bp = _round_up(B, _SUBLANE)
    Np = _round_up(N, _LANE)
    # Reserve one extra lane (index d) for the folded denominator column.
    dp = _round_up(d + 1, _LANE)

    f32 = jnp.float32
    seq = sequence_bt.astype(f32)
    Wu, Wr, Wb, W, Wx, V = (a.astype(f32) for a in (Wu, Wr, Wb, W, Wx, V))

    # ---- time-invariant precompute (done once in XLA) ----------------------
    U = Wu @ V                                                    # (d, N)
    UTW = (U.T @ W)[:, 0]                                         # (N,)
    R = Wr @ V                                                    # (d, N)

    M = (jnp.zeros((dp, Np + dp), f32)
         .at[:d, :N].set(U)                                       # bt @ U
         .at[:d, Np:Np + d].set(Wb.T))                            # bt @ Wb.T
    RT = (jnp.zeros((Np, dp), f32)
          .at[:N, :d].set(R.T)                                    # num @ R.T
          .at[:N, d].set(1.0))                                    # row-sum (denominator)
    utw = jnp.zeros((1, Np), f32).at[0, :N].set(UTW)
    wx = jnp.zeros((1, dp), f32).at[0, :d].set(Wx[:, 0])

    # Padded sequence, batch-major: seq_p[t] is the (Bp, 1) column x_t.
    seq_p = jnp.zeros((T, Bp, 1), f32).at[:, :B, 0].set(seq.T)

    if batch_block is None:
        # v7x: pass batch_block = Bp // 2 (once Bp >= 16) to split the padded
        # batch across the two TensorCores via the 'parallel' grid axis.
        batch_block = Bp
    assert batch_block % _SUBLANE == 0 and Bp % batch_block == 0
    n_blocks = Bp // batch_block
    unroll = T if T <= 16 else 8

    kernel = functools.partial(_tpru_recurrence_kernel, den_col=d, unroll=unroll)
    out = pl.pallas_call(
        kernel,
        out_shape=jax.ShapeDtypeStruct((Bp, dp), f32),
        grid=(n_blocks,),
        in_specs=[
            pl.BlockSpec((T, batch_block, 1), lambda i: (0, i, 0)),
            pl.BlockSpec((1, Np), lambda i: (0, 0)),
            pl.BlockSpec((1, dp), lambda i: (0, 0)),
            pl.BlockSpec((dp, Np + dp), lambda i: (0, 0)),
            pl.BlockSpec((Np, dp), lambda i: (0, 0)),
        ],
        out_specs=pl.BlockSpec((batch_block, dp), lambda i: (i, 0)),
        compiler_params=pltpu.CompilerParams(
            dimension_semantics=("parallel",)),
    )(seq_p, utw, wx, M, RT)
    return out[:B, :d]


def tpru_encoder_ref(sequence_bt, Wu, Wr, Wb, W, Wx, V):
    """Pure-JAX transcription of the PyTorch forward, used for verification."""
    B, T = sequence_bt.shape
    d = Wu.shape[0]
    bt = jnp.zeros((B, d), jnp.float32)
    for t in range(T):
        xtT = sequence_bt[:, t][None, :]                          # (1, B)
        U = Wu @ V
        fxt = jax.nn.relu(U.T @ W @ xtT)
        fbt = jax.nn.relu(U.T @ bt.T)
        num = (fbt + fxt) ** 2
        den = jnp.sum(num, axis=0, keepdims=True) + 1e-6
        ft = num / den
        R = Wr @ V
        b = R @ ft
        gt = jax.nn.sigmoid(Wb @ bt.T + Wx @ xtT)
        bt = (gt * jnp.tanh(b) + (1.0 - gt) * bt.T).T
    return bt


if __name__ == "__main__":
    # Small shapes consistent with the module: d_prime must be 1 (see note above).
    B, T, d, d_prime, N = 2, 8, 32, 1, 16

    key = jax.random.PRNGKey(0)
    k_seq, k_wu, k_wr, k_wb, k_w, k_wx, k_v = jax.random.split(key, 7)
    sequence = jax.random.normal(k_seq, (B, T), jnp.float32)
    Wu = jax.random.normal(k_wu, (d, d), jnp.float32)
    Wr = jax.random.normal(k_wr, (d, d), jnp.float32)
    Wb = jax.random.normal(k_wb, (d, d), jnp.float32)
    W = jax.random.normal(k_w, (d, d_prime), jnp.float32)
    Wx = jax.random.normal(k_wx, (d, d_prime), jnp.float32)
    V = jax.random.normal(k_v, (d, N), jnp.float32)

    out = jax.jit(tpru_encoder_forward)(sequence, Wu, Wr, Wb, W, Wx, V)
    out = jax.block_until_ready(out)

    ref = tpru_encoder_ref(sequence, Wu, Wr, Wb, W, Wx, V)
    assert out.shape == (B, d), out.shape
    # Tolerance covers MXU default-precision (bf16-pass) differences between
    # the in-kernel dots and the XLA reference matmuls.
    err = float(jnp.max(jnp.abs(out - ref)))
    assert jnp.allclose(out, ref, atol=2e-3, rtol=2e-3), err
    print("KERNEL_OK")
</pallas_src>

<mosaic_0001>
module attributes {stable_mosaic.version = 11 : i64} {
  func.func @_tpru_recurrence_kernel(%arg0: i32, %arg1: memref<8x8x1xf32, #tpu.memory_space<vmem>>, %arg2: memref<1x128xf32, #tpu.memory_space<vmem>>, %arg3: memref<1x128xf32, #tpu.memory_space<vmem>>, %arg4: memref<128x256xf32, #tpu.memory_space<vmem>>, %arg5: memref<128x128xf32, #tpu.memory_space<vmem>>, %arg6: memref<8x128xf32, #tpu.memory_space<vmem>>) attributes {dimension_semantics = [#tpu.dimension_semantics<parallel>], iteration_bounds = array<i64: 1>, scalar_prefetch = 0 : i64, scratch_operands = 0 : i64, tpu.core_type = #tpu.core_type<tc>, window_params = [{transform_indices = @transform_0, window_bounds = array<i64: 8, 8, 1>}, {pipeline_mode = #tpu.pipeline_mode<synchronous>, transform_indices = @transform_1, window_bounds = array<i64: 1, 128>}, {pipeline_mode = #tpu.pipeline_mode<synchronous>, transform_indices = @transform_2, window_bounds = array<i64: 1, 128>}, {pipeline_mode = #tpu.pipeline_mode<synchronous>, transform_indices = @transform_3, window_bounds = array<i64: 128, 256>}, {pipeline_mode = #tpu.pipeline_mode<synchronous>, transform_indices = @transform_4, window_bounds = array<i64: 128, 128>}, {transform_indices = @transform_5, window_bounds = array<i64: 8, 128>}]} {
    %cst = arith.constant 0.000000e+00 : f32
    %0 = vector.broadcast %cst : f32 to vector<8x128xf32>
    %c0_i32 = arith.constant 0 : i32
    %1 = arith.index_cast %c0_i32 : i32 to index
    %c0 = arith.constant 0 : index
    %c0_0 = arith.constant 0 : index
    %2 = vector.load %arg1[%1, %c0, %c0_0] : memref<8x8x1xf32, #tpu.memory_space<vmem>>, vector<1x8x1xf32>
    %3 = vector.shape_cast %2 : vector<1x8x1xf32> to vector<8x1xf32>
    %c0_1 = arith.constant 0 : index
    %c0_2 = arith.constant 0 : index
    %4 = vector.load %arg4[%c0_1, %c0_2] : memref<128x256xf32, #tpu.memory_space<vmem>>, vector<128x256xf32>
    %cst_3 = arith.constant dense<0.000000e+00> : vector<8x256xf32>
    %5 = tpu.matmul %0, %4, %cst_3 {dimension_numbers = #tpu.dot_dimension_numbers<[1], [0], [0], [1], [0, 0, 1, 1], [], []>} : vector<8x128xf32>, vector<128x256xf32>, vector<8x256xf32> -> vector<8x256xf32>
    %c0_4 = arith.constant 0 : index
    %c0_5 = arith.constant 0 : index
    %6 = vector.load %arg2[%c0_4, %c0_5] : memref<1x128xf32, #tpu.memory_space<vmem>>, vector<1x128xf32>
    %7 = vector.broadcast %3 : vector<8x1xf32> to vector<8x128xf32>
    %8 = vector.broadcast %6 : vector<1x128xf32> to vector<8x128xf32>
    %9 = arith.mulf %7, %8 : vector<8x128xf32>
    %cst_6 = arith.constant 0.000000e+00 : f32
    %10 = vector.broadcast %cst_6 : f32 to vector<8x128xf32>
    %11 = arith.maximumf %9, %10 : vector<8x128xf32>
    %12 = vector.extract_strided_slice %5 {offsets = [0, 0], sizes = [8, 128], strides = [1, 1]} : vector<8x256xf32> to vector<8x128xf32>
    %cst_7 = arith.constant 0.000000e+00 : f32
    %13 = vector.broadcast %cst_7 : f32 to vector<8x128xf32>
    %14 = arith.maximumf %12, %13 : vector<8x128xf32>
    %15 = arith.addf %14, %11 : vector<8x128xf32>
    %16 = arith.mulf %15, %15 : vector<8x128xf32>
    %c0_8 = arith.constant 0 : index
    %c0_9 = arith.constant 0 : index
    %17 = vector.load %arg5[%c0_8, %c0_9] : memref<128x128xf32, #tpu.memory_space<vmem>>, vector<128x128xf32>
    %cst_10 = arith.constant dense<0.000000e+00> : vector<8x128xf32>
    %18 = tpu.matmul %16, %17, %cst_10 {dimension_numbers = #tpu.dot_dimension_numbers<[1], [0], [0], [1], [0, 0, 1, 1], [], []>} : vector<8x128xf32>, vector<128x128xf32>, vector<8x128xf32> -> vector<8x128xf32>
    %19 = vector.extract_strided_slice %18 {offsets = [0, 32], sizes = [8, 1], strides = [1, 1]} : vector<8x128xf32> to vector<8x1xf32>
    %cst_11 = arith.constant 9.99999997E-7 : f32
    %20 = vector.broadcast %cst_11 : f32 to vector<8x1xf32>
    %21 = arith.addf %19, %20 : vector<8x1xf32>
    %22 = tpu.reciprocal %21 {approx = true} : vector<8x1xf32> -> vector<8x1xf32>
    %23 = arith.mulf %21, %22 : vector<8x1xf32>
    %cst_12 = arith.constant 2.000000e+00 : f32
    %24 = vector.broadcast %cst_12 : f32 to vector<8x1xf32>
    %25 = arith.subf %24, %23 : vector<8x1xf32>
    %26 = arith.mulf %22, %25 : vector<8x1xf32>
    %27 = vector.broadcast %26 : vector<8x1xf32> to vector<8x128xf32>
    %28 = arith.mulf %18, %27 : vector<8x128xf32>
    %29 = vector.extract_strided_slice %5 {offsets = [0, 128], sizes = [8, 128], strides = [1, 1]} : vector<8x256xf32> to vector<8x128xf32>
    %c0_13 = arith.constant 0 : index
    %c0_14 = arith.constant 0 : index
    %30 = vector.load %arg3[%c0_13, %c0_14] : memref<1x128xf32, #tpu.memory_space<vmem>>, vector<1x128xf32>
    %31 = vector.broadcast %3 : vector<8x1xf32> to vector<8x128xf32>
    %32 = vector.broadcast %30 : vector<1x128xf32> to vector<8x128xf32>
    %33 = arith.mulf %31, %32 : vector<8x128xf32>
    %34 = arith.addf %29, %33 : vector<8x128xf32>
    %cst_15 = arith.constant 5.000000e-01 : f32
    %35 = vector.broadcast %cst_15 : f32 to vector<8x128xf32>
    %36 = arith.mulf %35, %34 : vector<8x128xf32>
    %37 = math.tanh %36 : vector<8x128xf32>
    %cst_16 = arith.constant 5.000000e-01 : f32
    %38 = vector.broadcast %cst_16 : f32 to vector<8x128xf32>
    %39 = arith.mulf %38, %37 : vector<8x128xf32>
    %cst_17 = arith.constant 5.000000e-01 : f32
    %40 = vector.broadcast %cst_17 : f32 to vector<8x128xf32>
    %41 = arith.addf %39, %40 : vector<8x128xf32>
    %42 = math.tanh %28 : vector<8x128xf32>
    %43 = arith.subf %42, %0 : vector<8x128xf32>
    %44 = arith.mulf %41, %43 : vector<8x128xf32>
    %45 = arith.addf %0, %44 : vector<8x128xf32>
    %c1_i32 = arith.constant 1 : i32
    %46 = arith.index_cast %c1_i32 : i32 to index
    %c0_18 = arith.constant 0 : index
    %c0_19 = arith.constant 0 : index
    %47 = vector.load %arg1[%46, %c0_18, %c0_19] : memref<8x8x1xf32, #tpu.memory_space<vmem>>, vector<1x8x1xf32>
    %48 = vector.shape_cast %47 : vector<1x8x1xf32> to vector<8x1xf32>
    %c0_20 = arith.constant 0 : index
    %c0_21 = arith.constant 0 : index
    %49 = vector.load %arg4[%c0_20, %c0_21] : memref<128x256xf32, #tpu.memory_space<vmem>>, vector<128x256xf32>
    %cst_22 = arith.constant dense<0.000000e+00> : vector<8x256xf32>
    %50 = tpu.matmul %45, %49, %cst_22 {dimension_numbers = #tpu.dot_dimension_numbers<[1], [0], [0], [1], [0, 0, 1, 1], [], []>} : vector<8x128xf32>, vector<128x256xf32>, vector<8x256xf32> -> vector<8x256xf32>
    %c0_23 = arith.constant 0 : index
    %c0_24 = arith.constant 0 : index
    %51 = vector.load %arg2[%c0_23, %c0_24] : memref<1x128xf32, #tpu.memory_space<vmem>>, vector<1x128xf32>
    %52 = vector.broadcast %48 : vector<8x1xf32> to vector<8x128xf32>
    %53 = vector.broadcast %51 : vector<1x128xf32> to vector<8x128xf32>
    %54 = arith.mulf %52, %53 : vector<8x128xf32>
    %cst_25 = arith.constant 0.000000e+00 : f32
    %55 = vector.broadcast %cst_25 : f32 to vector<8x128xf32>
    %56 = arith.maximumf %54, %55 : vector<8x128xf32>
    %57 = vector.extract_strided_slice %50 {offsets = [0, 0], sizes = [8, 128], strides = [1, 1]} : vector<8x256xf32> to vector<8x128xf32>
    %cst_26 = arith.constant 0.000000e+00 : f32
    %58 = vector.broadcast %cst_26 : f32 to vector<8x128xf32>
    %59 = arith.maximumf %57, %58 : vector<8x128xf32>
    %60 = arith.addf %59, %56 : vector<8x128xf32>
    %61 = arith.mulf %60, %60 : vector<8x128xf32>
    %c0_27 = arith.constant 0 : index
    %c0_28 = arith.constant 0 : index
    %62 = vector.load %arg5[%c0_27, %c0_28] : memref<128x128xf32, #tpu.memory_space<vmem>>, vector<128x128xf32>
    %cst_29 = arith.constant dense<0.000000e+00> : vector<8x128xf32>
    %63 = tpu.matmul %61, %62, %cst_29 {dimension_numbers = #tpu.dot_dimension_numbers<[1], [0], [0], [1], [0, 0, 1, 1], [], []>} : vector<8x128xf32>, vector<128x128xf32>, vector<8x128xf32> -> vector<8x128xf32>
    %64 = vector.extract_strided_slice %63 {offsets = [0, 32], sizes = [8, 1], strides = [1, 1]} : vector<8x128xf32> to vector<8x1xf32>
    %cst_30 = arith.constant 9.99999997E-7 : f32
    %65 = vector.broadcast %cst_30 : f32 to vector<8x1xf32>
    %66 = arith.addf %64, %65 : vector<8x1xf32>
    %67 = tpu.reciprocal %66 {approx = true} : vector<8x1xf32> -> vector<8x1xf32>
    %68 = arith.mulf %66, %67 : vector<8x1xf32>
    %cst_31 = arith.constant 2.000000e+00 : f32
    %69 = vector.broadcast %cst_31 : f32 to vector<8x1xf32>
    %70 = arith.subf %69, %68 : vector<8x1xf32>
    %71 = arith.mulf %67, %70 : vector<8x1xf32>
    %72 = vector.broadcast %71 : vector<8x1xf32> to vector<8x128xf32>
    %73 = arith.mulf %63, %72 : vector<8x128xf32>
    %74 = vector.extract_strided_slice %50 {offsets = [0, 128], sizes = [8, 128], strides = [1, 1]} : vector<8x256xf32> to vector<8x128xf32>
    %c0_32 = arith.constant 0 : index
    %c0_33 = arith.constant 0 : index
    %75 = vector.load %arg3[%c0_32, %c0_33] : memref<1x128xf32, #tpu.memory_space<vmem>>, vector<1x128xf32>
    %76 = vector.broadcast %48 : vector<8x1xf32> to vector<8x128xf32>
    %77 = vector.broadcast %75 : vector<1x128xf32> to vector<8x128xf32>
    %78 = arith.mulf %76, %77 : vector<8x128xf32>
    %79 = arith.addf %74, %78 : vector<8x128xf32>
    %cst_34 = arith.constant 5.000000e-01 : f32
    %80 = vector.broadcast %cst_34 : f32 to vector<8x128xf32>
    %81 = arith.mulf %80, %79 : vector<8x128xf32>
    %82 = math.tanh %81 : vector<8x128xf32>
    %cst_35 = arith.constant 5.000000e-01 : f32
    %83 = vector.broadcast %cst_35 : f32 to vector<8x128xf32>
    %84 = arith.mulf %83, %82 : vector<8x128xf32>
    %cst_36 = arith.constant 5.000000e-01 : f32
    %85 = vector.broadcast %cst_36 : f32 to vector<8x128xf32>
    %86 = arith.addf %84, %85 : vector<8x128xf32>
    %87 = math.tanh %73 : vector<8x128xf32>
    %88 = arith.subf %87, %45 : vector<8x128xf32>
    %89 = arith.mulf %86, %88 : vector<8x128xf32>
    %90 = arith.addf %45, %89 : vector<8x128xf32>
    %c2_i32 = arith.constant 2 : i32
    %91 = arith.index_cast %c2_i32 : i32 to index
    %c0_37 = arith.constant 0 : index
    %c0_38 = arith.constant 0 : index
    %92 = vector.load %arg1[%91, %c0_37, %c0_38] : memref<8x8x1xf32, #tpu.memory_space<vmem>>, vector<1x8x1xf32>
    %93 = vector.shape_cast %92 : vector<1x8x1xf32> to vector<8x1xf32>
    %c0_39 = arith.constant 0 : index
    %c0_40 = arith.constant 0 : index
    %94 = vector.load %arg4[%c0_39, %c0_40] : memref<128x256xf32, #tpu.memory_space<vmem>>, vector<128x256xf32>
    %cst_41 = arith.constant dense<0.000000e+00> : vector<8x256xf32>
    %95 = tpu.matmul %90, %94, %cst_41 {dimension_numbers = #tpu.dot_dimension_numbers<[1], [0], [0], [1], [0, 0, 1, 1], [], []>} : vector<8x128xf32>, vector<128x256xf32>, vector<8x256xf32> -> vector<8x256xf32>
    %c0_42 = arith.constant 0 : index
    %c0_43 = arith.constant 0 : index
    %96 = vector.load %arg2[%c0_42, %c0_43] : memref<1x128xf32, #tpu.memory_space<vmem>>, vector<1x128xf32>
    %97 = vector.broadcast %93 : vector<8x1xf32> to vector<8x128xf32>
    %98 = vector.broadcast %96 : vector<1x128xf32> to vector<8x128xf32>
    %99 = arith.mulf %97, %98 : vector<8x128xf32>
    %cst_44 = arith.constant 0.000000e+00 : f32
    %100 = vector.broadcast %cst_44 : f32 to vector<8x128xf32>
    %101 = arith.maximumf %99, %100 : vector<8x128xf32>
    %102 = vector.extract_strided_slice %95 {offsets = [0, 0], sizes = [8, 128], strides = [1, 1]} : vector<8x256xf32> to vector<8x128xf32>
    %cst_45 = arith.constant 0.000000e+00 : f32
    %103 = vector.broadcast %cst_45 : f32 to vector<8x128xf32>
    %104 = arith.maximumf %102, %103 : vector<8x128xf32>
    %105 = arith.addf %104, %101 : vector<8x128xf32>
    %106 = arith.mulf %105, %105 : vector<8x128xf32>
    %c0_46 = arith.constant 0 : index
    %c0_47 = arith.constant 0 : index
    %107 = vector.load %arg5[%c0_46, %c0_47] : memref<128x128xf32, #tpu.memory_space<vmem>>, vector<128x128xf32>
    %cst_48 = arith.constant dense<0.000000e+00> : vector<8x128xf32>
    %108 = tpu.matmul %106, %107, %cst_48 {dimension_numbers = #tpu.dot_dimension_numbers<[1], [0], [0], [1], [0, 0, 1, 1], [], []>} : vector<8x128xf32>, vector<128x128xf32>, vector<8x128xf32> -> vector<8x128xf32>
    %109 = vector.extract_strided_slice %108 {offsets = [0, 32], sizes = [8, 1], strides = [1, 1]} : vector<8x128xf32> to vector<8x1xf32>
    %cst_49 = arith.constant 9.99999997E-7 : f32
    %110 = vector.broadcast %cst_49 : f32 to vector<8x1xf32>
    %111 = arith.addf %109, %110 : vector<8x1xf32>
    %112 = tpu.reciprocal %111 {approx = true} : vector<8x1xf32> -> vector<8x1xf32>
    %113 = arith.mulf %111, %112 : vector<8x1xf32>
    %cst_50 = arith.constant 2.000000e+00 : f32
    %114 = vector.broadcast %cst_50 : f32 to vector<8x1xf32>
    %115 = arith.subf %114, %113 : vector<8x1xf32>
    %116 = arith.mulf %112, %115 : vector<8x1xf32>
    %117 = vector.broadcast %116 : vector<8x1xf32> to vector<8x128xf32>
    %118 = arith.mulf %108, %117 : vector<8x128xf32>
    %119 = vector.extract_strided_slice %95 {offsets = [0, 128], sizes = [8, 128], strides = [1, 1]} : vector<8x256xf32> to vector<8x128xf32>
    %c0_51 = arith.constant 0 : index
    %c0_52 = arith.constant 0 : index
    %120 = vector.load %arg3[%c0_51, %c0_52] : memref<1x128xf32, #tpu.memory_space<vmem>>, vector<1x128xf32>
    %121 = vector.broadcast %93 : vector<8x1xf32> to vector<8x128xf32>
    %122 = vector.broadcast %120 : vector<1x128xf32> to vector<8x128xf32>
    %123 = arith.mulf %121, %122 : vector<8x128xf32>
    %124 = arith.addf %119, %123 : vector<8x128xf32>
    %cst_53 = arith.constant 5.000000e-01 : f32
    %125 = vector.broadcast %cst_53 : f32 to vector<8x128xf32>
    %126 = arith.mulf %125, %124 : vector<8x128xf32>
    %127 = math.tanh %126 : vector<8x128xf32>
    %cst_54 = arith.constant 5.000000e-01 : f32
    %128 = vector.broadcast %cst_54 : f32 to vector<8x128xf32>
    %129 = arith.mulf %128, %127 : vector<8x128xf32>
    %cst_55 = arith.constant 5.000000e-01 : f32
    %130 = vector.broadcast %cst_55 : f32 to vector<8x128xf32>
    %131 = arith.addf %129, %130 : vector<8x128xf32>
    %132 = math.tanh %118 : vector<8x128xf32>
    %133 = arith.subf %132, %90 : vector<8x128xf32>
    %134 = arith.mulf %131, %133 : vector<8x128xf32>
    %135 = arith.addf %90, %134 : vector<8x128xf32>
    %c3_i32 = arith.constant 3 : i32
    %136 = arith.index_cast %c3_i32 : i32 to index
    %c0_56 = arith.constant 0 : index
    %c0_57 = arith.constant 0 : index
    %137 = vector.load %arg1[%136, %c0_56, %c0_57] : memref<8x8x1xf32, #tpu.memory_space<vmem>>, vector<1x8x1xf32>
    %138 = vector.shape_cast %137 : vector<1x8x1xf32> to vector<8x1xf32>
    %c0_58 = arith.constant 0 : index
    %c0_59 = arith.constant 0 : index
    %139 = vector.load %arg4[%c0_58, %c0_59] : memref<128x256xf32, #tpu.memory_space<vmem>>, vector<128x256xf32>
    %cst_60 = arith.constant dense<0.000000e+00> : vector<8x256xf32>
    %140 = tpu.matmul %135, %139, %cst_60 {dimension_numbers = #tpu.dot_dimension_numbers<[1], [0], [0], [1], [0, 0, 1, 1], [], []>} : vector<8x128xf32>, vector<128x256xf32>, vector<8x256xf32> -> vector<8x256xf32>
    %c0_61 = arith.constant 0 : index
    %c0_62 = arith.constant 0 : index
    %141 = vector.load %arg2[%c0_61, %c0_62] : memref<1x128xf32, #tpu.memory_space<vmem>>, vector<1x128xf32>
    %142 = vector.broadcast %138 : vector<8x1xf32> to vector<8x128xf32>
    %143 = vector.broadcast %141 : vector<1x128xf32> to vector<8x128xf32>
    %144 = arith.mulf %142, %143 : vector<8x128xf32>
    %cst_63 = arith.constant 0.000000e+00 : f32
    %145 = vector.broadcast %cst_63 : f32 to vector<8x128xf32>
    %146 = arith.maximumf %144, %145 : vector<8x128xf32>
    %147 = vector.extract_strided_slice %140 {offsets = [0, 0], sizes = [8, 128], strides = [1, 1]} : vector<8x256xf32> to vector<8x128xf32>
    %cst_64 = arith.constant 0.000000e+00 : f32
    %148 = vector.broadcast %cst_64 : f32 to vector<8x128xf32>
    %149 = arith.maximumf %147, %148 : vector<8x128xf32>
    %150 = arith.addf %149, %146 : vector<8x128xf32>
    %151 = arith.mulf %150, %150 : vector<8x128xf32>
    %c0_65 = arith.constant 0 : index
    %c0_66 = arith.constant 0 : index
    %152 = vector.load %arg5[%c0_65, %c0_66] : memref<128x128xf32, #tpu.memory_space<vmem>>, vector<128x128xf32>
    %cst_67 = arith.constant dense<0.000000e+00> : vector<8x128xf32>
    %153 = tpu.matmul %151, %152, %cst_67 {dimension_numbers = #tpu.dot_dimension_numbers<[1], [0], [0], [1], [0, 0, 1, 1], [], []>} : vector<8x128xf32>, vector<128x128xf32>, vector<8x128xf32> -> vector<8x128xf32>
    %154 = vector.extract_strided_slice %153 {offsets = [0, 32], sizes = [8, 1], strides = [1, 1]} : vector<8x128xf32> to vector<8x1xf32>
    %cst_68 = arith.constant 9.99999997E-7 : f32
    %155 = vector.broadcast %cst_68 : f32 to vector<8x1xf32>
    %156 = arith.addf %154, %155 : vector<8x1xf32>
    %157 = tpu.reciprocal %156 {approx = true} : vector<8x1xf32> -> vector<8x1xf32>
    %158 = arith.mulf %156, %157 : vector<8x1xf32>
    %cst_69 = arith.constant 2.000000e+00 : f32
    %159 = vector.broadcast %cst_69 : f32 to vector<8x1xf32>
    %160 = arith.subf %159, %158 : vector<8x1xf32>
    %161 = arith.mulf %157, %160 : vector<8x1xf32>
    %162 = vector.broadcast %161 : vector<8x1xf32> to vector<8x128xf32>
    %163 = arith.mulf %153, %162 : vector<8x128xf32>
    %164 = vector.extract_strided_slice %140 {offsets = [0, 128], sizes = [8, 128], strides = [1, 1]} : vector<8x256xf32> to vector<8x128xf32>
    %c0_70 = arith.constant 0 : index
    %c0_71 = arith.constant 0 : index
    %165 = vector.load %arg3[%c0_70, %c0_71] : memref<1x128xf32, #tpu.memory_space<vmem>>, vector<1x128xf32>
    %166 = vector.broadcast %138 : vector<8x1xf32> to vector<8x128xf32>
    %167 = vector.broadcast %165 : vector<1x128xf32> to vector<8x128xf32>
    %168 = arith.mulf %166, %167 : vector<8x128xf32>
    %169 = arith.addf %164, %168 : vector<8x128xf32>
    %cst_72 = arith.constant 5.000000e-01 : f32
    %170 = vector.broadcast %cst_72 : f32 to vector<8x128xf32>
    %171 = arith.mulf %170, %169 : vector<8x128xf32>
    %172 = math.tanh %171 : vector<8x128xf32>
    %cst_73 = arith.constant 5.000000e-01 : f32
    %173 = vector.broadcast %cst_73 : f32 to vector<8x128xf32>
    %174 = arith.mulf %173, %172 : vector<8x128xf32>
    %cst_74 = arith.constant 5.000000e-01 : f32
    %175 = vector.broadcast %cst_74 : f32 to vector<8x128xf32>
    %176 = arith.addf %174, %175 : vector<8x128xf32>
    %177 = math.tanh %163 : vector<8x128xf32>
    %178 = arith.subf %177, %135 : vector<8x128xf32>
    %179 = arith.mulf %176, %178 : vector<8x128xf32>
    %180 = arith.addf %135, %179 : vector<8x128xf32>
    %c4_i32 = arith.constant 4 : i32
    %181 = arith.index_cast %c4_i32 : i32 to index
    %c0_75 = arith.constant 0 : index
    %c0_76 = arith.constant 0 : index
    %182 = vector.load %arg1[%181, %c0_75, %c0_76] : memref<8x8x1xf32, #tpu.memory_space<vmem>>, vector<1x8x1xf32>
    %183 = vector.shape_cast %182 : vector<1x8x1xf32> to vector<8x1xf32>
    %c0_77 = arith.constant 0 : index
    %c0_78 = arith.constant 0 : index
    %184 = vector.load %arg4[%c0_77, %c0_78] : memref<128x256xf32, #tpu.memory_space<vmem>>, vector<128x256xf32>
    %cst_79 = arith.constant dense<0.000000e+00> : vector<8x256xf32>
    %185 = tpu.matmul %180, %184, %cst_79 {dimension_numbers = #tpu.dot_dimension_numbers<[1], [0], [0], [1], [0, 0, 1, 1], [], []>} : vector<8x128xf32>, vector<128x256xf32>, vector<8x256xf32> -> vector<8x256xf32>
    %c0_80 = arith.constant 0 : index
    %c0_81 = arith.constant 0 : index
    %186 = vector.load %arg2[%c0_80, %c0_81] : memref<1x128xf32, #tpu.memory_space<vmem>>, vector<1x128xf32>
    %187 = vector.broadcast %183 : vector<8x1xf32> to vector<8x128xf32>
    %188 = vector.broadcast %186 : vector<1x128xf32> to vector<8x128xf32>
    %189 = arith.mulf %187, %188 : vector<8x128xf32>
    %cst_82 = arith.constant 0.000000e+00 : f32
    %190 = vector.broadcast %cst_82 : f32 to vector<8x128xf32>
    %191 = arith.maximumf %189, %190 : vector<8x128xf32>
    %192 = vector.extract_strided_slice %185 {offsets = [0, 0], sizes = [8, 128], strides = [1, 1]} : vector<8x256xf32> to vector<8x128xf32>
    %cst_83 = arith.constant 0.000000e+00 : f32
    %193 = vector.broadcast %cst_83 : f32 to vector<8x128xf32>
    %194 = arith.maximumf %192, %193 : vector<8x128xf32>
    %195 = arith.addf %194, %191 : vector<8x128xf32>
    %196 = arith.mulf %195, %195 : vector<8x128xf32>
    %c0_84 = arith.constant 0 : index
    %c0_85 = arith.constant 0 : index
    %197 = vector.load %arg5[%c0_84, %c0_85] : memref<128x128xf32, #tpu.memory_space<vmem>>, vector<128x128xf32>
    %cst_86 = arith.constant dense<0.000000e+00> : vector<8x128xf32>
    %198 = tpu.matmul %196, %197, %cst_86 {dimension_numbers = #tpu.dot_dimension_numbers<[1], [0], [0], [1], [0, 0, 1, 1], [], []>} : vector<8x128xf32>, vector<128x128xf32>, vector<8x128xf32> -> vector<8x128xf32>
    %199 = vector.extract_strided_slice %198 {offsets = [0, 32], sizes = [8, 1], strides = [1, 1]} : vector<8x128xf32> to vector<8x1xf32>
    %cst_87 = arith.constant 9.99999997E-7 : f32
    %200 = vector.broadcast %cst_87 : f32 to vector<8x1xf32>
    %201 = arith.addf %199, %200 : vector<8x1xf32>
    %202 = tpu.reciprocal %201 {approx = true} : vector<8x1xf32> -> vector<8x1xf32>
    %203 = arith.mulf %201, %202 : vector<8x1xf32>
    %cst_88 = arith.constant 2.000000e+00 : f32
    %204 = vector.broadcast %cst_88 : f32 to vector<8x1xf32>
    %205 = arith.subf %204, %203 : vector<8x1xf32>
    %206 = arith.mulf %202, %205 : vector<8x1xf32>
    %207 = vector.broadcast %206 : vector<8x1xf32> to vector<8x128xf32>
    %208 = arith.mulf %198, %207 : vector<8x128xf32>
    %209 = vector.extract_strided_slice %185 {offsets = [0, 128], sizes = [8, 128], strides = [1, 1]} : vector<8x256xf32> to vector<8x128xf32>
    %c0_89 = arith.constant 0 : index
    %c0_90 = arith.constant 0 : index
    %210 = vector.load %arg3[%c0_89, %c0_90] : memref<1x128xf32, #tpu.memory_space<vmem>>, vector<1x128xf32>
    %211 = vector.broadcast %183 : vector<8x1xf32> to vector<8x128xf32>
    %212 = vector.broadcast %210 : vector<1x128xf32> to vector<8x128xf32>
    %213 = arith.mulf %211, %212 : vector<8x128xf32>
    %214 = arith.addf %209, %213 : vector<8x128xf32>
    %cst_91 = arith.constant 5.000000e-01 : f32
    %215 = vector.broadcast %cst_91 : f32 to vector<8x128xf32>
    %216 = arith.mulf %215, %214 : vector<8x128xf32>
    %217 = math.tanh %216 : vector<8x128xf32>
    %cst_92 = arith.constant 5.000000e-01 : f32
    %218 = vector.broadcast %cst_92 : f32 to vector<8x128xf32>
    %219 = arith.mulf %218, %217 : vector<8x128xf32>
    %cst_93 = arith.constant 5.000000e-01 : f32
    %220 = vector.broadcast %cst_93 : f32 to vector<8x128xf32>
    %221 = arith.addf %219, %220 : vector<8x128xf32>
    %222 = math.tanh %208 : vector<8x128xf32>
    %223 = arith.subf %222, %180 : vector<8x128xf32>
    %224 = arith.mulf %221, %223 : vector<8x128xf32>
    %225 = arith.addf %180, %224 : vector<8x128xf32>
    %c5_i32 = arith.constant 5 : i32
    %226 = arith.index_cast %c5_i32 : i32 to index
    %c0_94 = arith.constant 0 : index
    %c0_95 = arith.constant 0 : index
    %227 = vector.load %arg1[%226, %c0_94, %c0_95] : memref<8x8x1xf32, #tpu.memory_space<vmem>>, vector<1x8x1xf32>
    %228 = vector.shape_cast %227 : vector<1x8x1xf32> to vector<8x1xf32>
    %c0_96 = arith.constant 0 : index
    %c0_97 = arith.constant 0 : index
    %229 = vector.load %arg4[%c0_96, %c0_97] : memref<128x256xf32, #tpu.memory_space<vmem>>, vector<128x256xf32>
    %cst_98 = arith.constant dense<0.000000e+00> : vector<8x256xf32>
    %230 = tpu.matmul %225, %229, %cst_98 {dimension_numbers = #tpu.dot_dimension_numbers<[1], [0], [0], [1], [0, 0, 1, 1], [], []>} : vector<8x128xf32>, vector<128x256xf32>, vector<8x256xf32> -> vector<8x256xf32>
    %c0_99 = arith.constant 0 : index
    %c0_100 = arith.constant 0 : index
    %231 = vector.load %arg2[%c0_99, %c0_100] : memref<1x128xf32, #tpu.memory_space<vmem>>, vector<1x128xf32>
    %232 = vector.broadcast %228 : vector<8x1xf32> to vector<8x128xf32>
    %233 = vector.broadcast %231 : vector<1x128xf32> to vector<8x128xf32>
    %234 = arith.mulf %232, %233 : vector<8x128xf32>
    %cst_101 = arith.constant 0.000000e+00 : f32
    %235 = vector.broadcast %cst_101 : f32 to vector<8x128xf32>
    %236 = arith.maximumf %234, %235 : vector<8x128xf32>
    %237 = vector.extract_strided_slice %230 {offsets = [0, 0], sizes = [8, 128], strides = [1, 1]} : vector<8x256xf32> to vector<8x128xf32>
    %cst_102 = arith.constant 0.000000e+00 : f32
    %238 = vector.broadcast %cst_102 : f32 to vector<8x128xf32>
    %239 = arith.maximumf %237, %238 : vector<8x128xf32>
    %240 = arith.addf %239, %236 : vector<8x128xf32>
    %241 = arith.mulf %240, %240 : vector<8x128xf32>
    %c0_103 = arith.constant 0 : index
    %c0_104 = arith.constant 0 : index
    %242 = vector.load %arg5[%c0_103, %c0_104] : memref<128x128xf32, #tpu.memory_space<vmem>>, vector<128x128xf32>
    %cst_105 = arith.constant dense<0.000000e+00> : vector<8x128xf32>
    %243 = tpu.matmul %241, %242, %cst_105 {dimension_numbers = #tpu.dot_dimension_numbers<[1], [0], [0], [1], [0, 0, 1, 1], [], []>} : vector<8x128xf32>, vector<128x128xf32>, vector<8x128xf32> -> vector<8x128xf32>
    %244 = vector.extract_strided_slice %243 {offsets = [0, 32], sizes = [8, 1], strides = [1, 1]} : vector<8x128xf32> to vector<8x1xf32>
    %cst_106 = arith.constant 9.99999997E-7 : f32
    %245 = vector.broadcast %cst_106 : f32 to vector<8x1xf32>
    %246 = arith.addf %244, %245 : vector<8x1xf32>
    %247 = tpu.reciprocal %246 {approx = true} : vector<8x1xf32> -> vector<8x1xf32>
    %248 = arith.mulf %246, %247 : vector<8x1xf32>
    %cst_107 = arith.constant 2.000000e+00 : f32
    %249 = vector.broadcast %cst_107 : f32 to vector<8x1xf32>
    %250 = arith.subf %249, %248 : vector<8x1xf32>
    %251 = arith.mulf %247, %250 : vector<8x1xf32>
    %252 = vector.broadcast %251 : vector<8x1xf32> to vector<8x128xf32>
    %253 = arith.mulf %243, %252 : vector<8x128xf32>
    %254 = vector.extract_strided_slice %230 {offsets = [0, 128], sizes = [8, 128], strides = [1, 1]} : vector<8x256xf32> to vector<8x128xf32>
    %c0_108 = arith.constant 0 : index
    %c0_109 = arith.constant 0 : index
    %255 = vector.load %arg3[%c0_108, %c0_109] : memref<1x128xf32, #tpu.memory_space<vmem>>, vector<1x128xf32>
    %256 = vector.broadcast %228 : vector<8x1xf32> to vector<8x128xf32>
    %257 = vector.broadcast %255 : vector<1x128xf32> to vector<8x128xf32>
    %258 = arith.mulf %256, %257 : vector<8x128xf32>
    %259 = arith.addf %254, %258 : vector<8x128xf32>
    %cst_110 = arith.constant 5.000000e-01 : f32
    %260 = vector.broadcast %cst_110 : f32 to vector<8x128xf32>
    %261 = arith.mulf %260, %259 : vector<8x128xf32>
    %262 = math.tanh %261 : vector<8x128xf32>
    %cst_111 = arith.constant 5.000000e-01 : f32
    %263 = vector.broadcast %cst_111 : f32 to vector<8x128xf32>
    %264 = arith.mulf %263, %262 : vector<8x128xf32>
    %cst_112 = arith.constant 5.000000e-01 : f32
    %265 = vector.broadcast %cst_112 : f32 to vector<8x128xf32>
    %266 = arith.addf %264, %265 : vector<8x128xf32>
    %267 = math.tanh %253 : vector<8x128xf32>
    %268 = arith.subf %267, %225 : vector<8x128xf32>
    %269 = arith.mulf %266, %268 : vector<8x128xf32>
    %270 = arith.addf %225, %269 : vector<8x128xf32>
    %c6_i32 = arith.constant 6 : i32
    %271 = arith.index_cast %c6_i32 : i32 to index
    %c0_113 = arith.constant 0 : index
    %c0_114 = arith.constant 0 : index
    %272 = vector.load %arg1[%271, %c0_113, %c0_114] : memref<8x8x1xf32, #tpu.memory_space<vmem>>, vector<1x8x1xf32>
    %273 = vector.shape_cast %272 : vector<1x8x1xf32> to vector<8x1xf32>
    %c0_115 = arith.constant 0 : index
    %c0_116 = arith.constant 0 : index
    %274 = vector.load %arg4[%c0_115, %c0_116] : memref<128x256xf32, #tpu.memory_space<vmem>>, vector<128x256xf32>
    %cst_117 = arith.constant dense<0.000000e+00> : vector<8x256xf32>
    %275 = tpu.matmul %270, %274, %cst_117 {dimension_numbers = #tpu.dot_dimension_numbers<[1], [0], [0], [1], [0, 0, 1, 1], [], []>} : vector<8x128xf32>, vector<128x256xf32>, vector<8x256xf32> -> vector<8x256xf32>
    %c0_118 = arith.constant 0 : index
    %c0_119 = arith.constant 0 : index
    %276 = vector.load %arg2[%c0_118, %c0_119] : memref<1x128xf32, #tpu.memory_space<vmem>>, vector<1x128xf32>
    %277 = vector.broadcast %273 : vector<8x1xf32> to vector<8x128xf32>
    %278 = vector.broadcast %276 : vector<1x128xf32> to vector<8x128xf32>
    %279 = arith.mulf %277, %278 : vector<8x128xf32>
    %cst_120 = arith.constant 0.000000e+00 : f32
    %280 = vector.broadcast %cst_120 : f32 to vector<8x128xf32>
    %281 = arith.maximumf %279, %280 : vector<8x128xf32>
    %282 = vector.extract_strided_slice %275 {offsets = [0, 0], sizes = [8, 128], strides = [1, 1]} : vector<8x256xf32> to vector<8x128xf32>
    %cst_121 = arith.constant 0.000000e+00 : f32
    %283 = vector.broadcast %cst_121 : f32 to vector<8x128xf32>
    %284 = arith.maximumf %282, %283 : vector<8x128xf32>
    %285 = arith.addf %284, %281 : vector<8x128xf32>
    %286 = arith.mulf %285, %285 : vector<8x128xf32>
    %c0_122 = arith.constant 0 : index
    %c0_123 = arith.constant 0 : index
    %287 = vector.load %arg5[%c0_122, %c0_123] : memref<128x128xf32, #tpu.memory_space<vmem>>, vector<128x128xf32>
    %cst_124 = arith.constant dense<0.000000e+00> : vector<8x128xf32>
    %288 = tpu.matmul %286, %287, %cst_124 {dimension_numbers = #tpu.dot_dimension_numbers<[1], [0], [0], [1], [0, 0, 1, 1], [], []>} : vector<8x128xf32>, vector<128x128xf32>, vector<8x128xf32> -> vector<8x128xf32>
    %289 = vector.extract_strided_slice %288 {offsets = [0, 32], sizes = [8, 1], strides = [1, 1]} : vector<8x128xf32> to vector<8x1xf32>
    %cst_125 = arith.constant 9.99999997E-7 : f32
    %290 = vector.broadcast %cst_125 : f32 to vector<8x1xf32>
    %291 = arith.addf %289, %290 : vector<8x1xf32>
    %292 = tpu.reciprocal %291 {approx = true} : vector<8x1xf32> -> vector<8x1xf32>
    %293 = arith.mulf %291, %292 : vector<8x1xf32>
    %cst_126 = arith.constant 2.000000e+00 : f32
    %294 = vector.broadcast %cst_126 : f32 to vector<8x1xf32>
    %295 = arith.subf %294, %293 : vector<8x1xf32>
    %296 = arith.mulf %292, %295 : vector<8x1xf32>
    %297 = vector.broadcast %296 : vector<8x1xf32> to vector<8x128xf32>
    %298 = arith.mulf %288, %297 : vector<8x128xf32>
    %299 = vector.extract_strided_slice %275 {offsets = [0, 128], sizes = [8, 128], strides = [1, 1]} : vector<8x256xf32> to vector<8x128xf32>
    %c0_127 = arith.constant 0 : index
    %c0_128 = arith.constant 0 : index
    %300 = vector.load %arg3[%c0_127, %c0_128] : memref<1x128xf32, #tpu.memory_space<vmem>>, vector<1x128xf32>
    %301 = vector.broadcast %273 : vector<8x1xf32> to vector<8x128xf32>
    %302 = vector.broadcast %300 : vector<1x128xf32> to vector<8x128xf32>
    %303 = arith.mulf %301, %302 : vector<8x128xf32>
    %304 = arith.addf %299, %303 : vector<8x128xf32>
    %cst_129 = arith.constant 5.000000e-01 : f32
    %305 = vector.broadcast %cst_129 : f32 to vector<8x128xf32>
    %306 = arith.mulf %305, %304 : vector<8x128xf32>
    %307 = math.tanh %306 : vector<8x128xf32>
    %cst_130 = arith.constant 5.000000e-01 : f32
    %308 = vector.broadcast %cst_130 : f32 to vector<8x128xf32>
    %309 = arith.mulf %308, %307 : vector<8x128xf32>
    %cst_131 = arith.constant 5.000000e-01 : f32
    %310 = vector.broadcast %cst_131 : f32 to vector<8x128xf32>
    %311 = arith.addf %309, %310 : vector<8x128xf32>
    %312 = math.tanh %298 : vector<8x128xf32>
    %313 = arith.subf %312, %270 : vector<8x128xf32>
    %314 = arith.mulf %311, %313 : vector<8x128xf32>
    %315 = arith.addf %270, %314 : vector<8x128xf32>
    %c7_i32 = arith.constant 7 : i32
    %316 = arith.index_cast %c7_i32 : i32 to index
    %c0_132 = arith.constant 0 : index
    %c0_133 = arith.constant 0 : index
    %317 = vector.load %arg1[%316, %c0_132, %c0_133] : memref<8x8x1xf32, #tpu.memory_space<vmem>>, vector<1x8x1xf32>
    %318 = vector.shape_cast %317 : vector<1x8x1xf32> to vector<8x1xf32>
    %c0_134 = arith.constant 0 : index
    %c0_135 = arith.constant 0 : index
    %319 = vector.load %arg4[%c0_134, %c0_135] : memref<128x256xf32, #tpu.memory_space<vmem>>, vector<128x256xf32>
    %cst_136 = arith.constant dense<0.000000e+00> : vector<8x256xf32>
    %320 = tpu.matmul %315, %319, %cst_136 {dimension_numbers = #tpu.dot_dimension_numbers<[1], [0], [0], [1], [0, 0, 1, 1], [], []>} : vector<8x128xf32>, vector<128x256xf32>, vector<8x256xf32> -> vector<8x256xf32>
    %c0_137 = arith.constant 0 : index
    %c0_138 = arith.constant 0 : index
    %321 = vector.load %arg2[%c0_137, %c0_138] : memref<1x128xf32, #tpu.memory_space<vmem>>, vector<1x128xf32>
    %322 = vector.broadcast %318 : vector<8x1xf32> to vector<8x128xf32>
    %323 = vector.broadcast %321 : vector<1x128xf32> to vector<8x128xf32>
    %324 = arith.mulf %322, %323 : vector<8x128xf32>
    %cst_139 = arith.constant 0.000000e+00 : f32
    %325 = vector.broadcast %cst_139 : f32 to vector<8x128xf32>
    %326 = arith.maximumf %324, %325 : vector<8x128xf32>
    %327 = vector.extract_strided_slice %320 {offsets = [0, 0], sizes = [8, 128], strides = [1, 1]} : vector<8x256xf32> to vector<8x128xf32>
    %cst_140 = arith.constant 0.000000e+00 : f32
    %328 = vector.broadcast %cst_140 : f32 to vector<8x128xf32>
    %329 = arith.maximumf %327, %328 : vector<8x128xf32>
    %330 = arith.addf %329, %326 : vector<8x128xf32>
    %331 = arith.mulf %330, %330 : vector<8x128xf32>
    %c0_141 = arith.constant 0 : index
    %c0_142 = arith.constant 0 : index
    %332 = vector.load %arg5[%c0_141, %c0_142] : memref<128x128xf32, #tpu.memory_space<vmem>>, vector<128x128xf32>
    %cst_143 = arith.constant dense<0.000000e+00> : vector<8x128xf32>
    %333 = tpu.matmul %331, %332, %cst_143 {dimension_numbers = #tpu.dot_dimension_numbers<[1], [0], [0], [1], [0, 0, 1, 1], [], []>} : vector<8x128xf32>, vector<128x128xf32>, vector<8x128xf32> -> vector<8x128xf32>
    %334 = vector.extract_strided_slice %333 {offsets = [0, 32], sizes = [8, 1], strides = [1, 1]} : vector<8x128xf32> to vector<8x1xf32>
    %cst_144 = arith.constant 9.99999997E-7 : f32
    %335 = vector.broadcast %cst_144 : f32 to vector<8x1xf32>
    %336 = arith.addf %334, %335 : vector<8x1xf32>
    %337 = tpu.reciprocal %336 {approx = true} : vector<8x1xf32> -> vector<8x1xf32>
    %338 = arith.mulf %336, %337 : vector<8x1xf32>
    %cst_145 = arith.constant 2.000000e+00 : f32
    %339 = vector.broadcast %cst_145 : f32 to vector<8x1xf32>
    %340 = arith.subf %339, %338 : vector<8x1xf32>
    %341 = arith.mulf %337, %340 : vector<8x1xf32>
    %342 = vector.broadcast %341 : vector<8x1xf32> to vector<8x128xf32>
    %343 = arith.mulf %333, %342 : vector<8x128xf32>
    %344 = vector.extract_strided_slice %320 {offsets = [0, 128], sizes = [8, 128], strides = [1, 1]} : vector<8x256xf32> to vector<8x128xf32>
    %c0_146 = arith.constant 0 : index
    %c0_147 = arith.constant 0 : index
    %345 = vector.load %arg3[%c0_146, %c0_147] : memref<1x128xf32, #tpu.memory_space<vmem>>, vector<1x128xf32>
    %346 = vector.broadcast %318 : vector<8x1xf32> to vector<8x128xf32>
    %347 = vector.broadcast %345 : vector<1x128xf32> to vector<8x128xf32>
    %348 = arith.mulf %346, %347 : vector<8x128xf32>
    %349 = arith.addf %344, %348 : vector<8x128xf32>
    %cst_148 = arith.constant 5.000000e-01 : f32
    %350 = vector.broadcast %cst_148 : f32 to vector<8x128xf32>
    %351 = arith.mulf %350, %349 : vector<8x128xf32>
    %352 = math.tanh %351 : vector<8x128xf32>
    %cst_149 = arith.constant 5.000000e-01 : f32
    %353 = vector.broadcast %cst_149 : f32 to vector<8x128xf32>
    %354 = arith.mulf %353, %352 : vector<8x128xf32>
    %cst_150 = arith.constant 5.000000e-01 : f32
    %355 = vector.broadcast %cst_150 : f32 to vector<8x128xf32>
    %356 = arith.addf %354, %355 : vector<8x128xf32>
    %357 = math.tanh %343 : vector<8x128xf32>
    %358 = arith.subf %357, %315 : vector<8x128xf32>
    %359 = arith.mulf %356, %358 : vector<8x128xf32>
    %360 = arith.addf %315, %359 : vector<8x128xf32>
    %c8_i32 = arith.constant 8 : i32
    %c0_151 = arith.constant 0 : index
    %c0_152 = arith.constant 0 : index
    %361 = vector.load %arg6[%c0_151, %c0_152] : memref<8x128xf32, #tpu.memory_space<vmem>>, vector<8x128xf32>
    tpu.vector_store %arg6[%c0_151, %c0_152], %360 {strides = array<i32>} : memref<8x128xf32, #tpu.memory_space<vmem>>, vector<8x128xf32>,
    return
  }
  func.func @transform_0(%arg0: i32) -> (i32, i32, i32) {
    %c0_i32 = arith.constant 0 : i32
    %c0_i32_0 = arith.constant 0 : i32
    %c0_i32_1 = arith.constant 0 : i32
    return %c0_i32, %arg0, %c0_i32_0 : i32, i32, i32
  }
  func.func @transform_1(%arg0: i32) -> (i32, i32) {
    %c0_i32 = arith.constant 0 : i32
    %c0_i32_0 = arith.constant 0 : i32
    %c0_i32_1 = arith.constant 0 : i32
    return %c0_i32, %c0_i32_0 : i32, i32
  }
  func.func @transform_2(%arg0: i32) -> (i32, i32) {
    %c0_i32 = arith.constant 0 : i32
    %c0_i32_0 = arith.constant 0 : i32
    %c0_i32_1 = arith.constant 0 : i32
    return %c0_i32, %c0_i32_0 : i32, i32
  }
  func.func @transform_3(%arg0: i32) -> (i32, i32) {
    %c0_i32 = arith.constant 0 : i32
    %c0_i32_0 = arith.constant 0 : i32
    %c0_i32_1 = arith.constant 0 : i32
    return %c0_i32, %c0_i32_0 : i32, i32
  }
  func.func @transform_4(%arg0: i32) -> (i32, i32) {
    %c0_i32 = arith.constant 0 : i32
    %c0_i32_0 = arith.constant 0 : i32
    %c0_i32_1 = arith.constant 0 : i32
    return %c0_i32, %c0_i32_0 : i32, i32
  }
  func.func @transform_5(%arg0: i32) -> (i32, i32) {
    %c0_i32 = arith.constant 0 : i32
    %c0_i32_0 = arith.constant 0 : i32
    return %arg0, %c0_i32 : i32, i32
  }
}

</mosaic_0001>

<bundles_post_ra>
// kernel: tpru_encoder_forward.1
= control target key start
LH: loop header
LB: loop body
LE: loop exit
PB: predicated region body
PF: predicated region fallthrough
CT: control target
= control target key end

     0   :  { %v1739_v6 = vmov 0   ;;  %v927_v45 = vmov 0.0   ;;  %v1743_v59 = vmov 32   ;;  %s1733_s3 = inlined_call_operand.vmem [shape: f32[128,256], index: 3, kind: input, shape index: {}]   ;;  %s1734_s0 = inlined_call_operand.vmem [shape: f32[8,8,1], index: 0, kind: input, shape index: {}]   ;;  %s1735_s4 = inlined_call_operand.vmem [shape: f32[128,128], index: 4, kind: input, shape index: {}]   ;;  %s1736_s1 = inlined_call_operand.vmem [shape: f32[1,128], index: 1, kind: input, shape index: {}]   ;;  %s1737_s2 = inlined_call_operand.vmem [shape: f32[1,128], index: 2, kind: input, shape index: {}]   ;;  %s1738_s5 = inlined_call_operand.vmem [shape: f32[8,128], index: 5, kind: output, shape index: {}]  }
   0x1   :  { %v962_v0 = vld [vmem:[%s1733_s3 + $0xf0] sm:$0xff]  ;;  %v967_v1 = vld [vmem:[%s1733_s3 + $0xf8] sm:$0xff]  ;;  %v972_v2 = vld [vmem:[%s1733_s3 + $0xe0] sm:$0xff]  ;;  %833 = vset.pattern.permute.xlu0 %v1739_v6  ;;  %835 = vset.pattern.permute.xlu1 %v1739_v6 }
   0x2   :  { %53 = vmatpush.msra.mxu0 %v962_v0  ;;  %73 = vmatpush.msra.mxu1 %v967_v1  ;;  %v979_v3 = vld [vmem:[%s1733_s3 + $0xe8] sm:$0xff]  ;;  %v984_v4 = vld [vmem:[%s1733_s3 + $0xd0] sm:$0xff]  ;;  %v989_v5 = vld [vmem:[%s1733_s3 + $0xd8] sm:$0xff] }
   0x3   :  { %169 = vmatpush.msra.mxu3 %v962_v0  ;;  %v998_v7 = vld [vmem:[%s1733_s3 + $0xc0] sm:$0xff]  ;;  %v1003_v8 = vld [vmem:[%s1733_s3 + $0xc8] sm:$0xff]  ;;  %v1012_v9 = vld [vmem:[%s1733_s3 + $0xb0] sm:$0xff]  ;;  %837 = vset.pattern.permute.xlu2 %v1739_v6 }
   0x4   :  { %54 = vmatpush.msra.mxu0 %v972_v2  ;;  %74 = vmatpush.msra.mxu1 %v979_v3  ;;  %v1017_v10 = vld [vmem:[%s1733_s3 + $0xb8] sm:$0xff]  ;;  %v1026_v11 = vld [vmem:[%s1733_s3 + $0xa0] sm:$0xff]  ;;  %v1031_v12 = vld [vmem:[%s1733_s3 + $0xa8] sm:$0xff] }
   0x5   :  { %170 = vmatpush.msra.mxu3 %v972_v2  ;;  %v1039_v13 = vld [vmem:[%s1733_s3 + $0x90] sm:$0xff]  ;;  %v1044_v14 = vld [vmem:[%s1733_s3 + $0x98] sm:$0xff]  ;;  %v20_v15 = vld [vmem:[%s1734_s0] sm:$0xff] }
   0x6   :  { %55 = vmatpush.msra.mxu0 %v984_v4  ;;  %75 = vmatpush.msra.mxu1 %v989_v5  ;;  %v1055_v16 = vld [vmem:[%s1735_s4 + $0x78] sm:$0xff]  ;;  %v1060_v17 = vld [vmem:[%s1735_s4 + $0x70] sm:$0xff]  ;;  %v1065_v18 = vld [vmem:[%s1733_s3 + $0x80] sm:$0xff] }
   0x7   :  { %171 = vmatpush.msra.mxu3 %v984_v4  ;;  %v1070_v19 = vld [vmem:[%s1733_s3 + $0x88] sm:$0xff]  ;;  %96 = vperm.xlu0 %833, %v20_v15   ;;  %v1083_v21 = vld [vmem:[%s1733_s3 + $0x70] sm:$0xff]  ;;  %v1088_v22 = vld [vmem:[%s1733_s3 + $0x78] sm:$0xff] }
   0x8   :  { %56 = vmatpush.msra.mxu0 %v998_v7  ;;  %76 = vmatpush.msra.mxu1 %v1003_v8  ;;  %v1078_v20 = vld [vmem:[%s1735_s4 + $0x68] sm:$0xff]  ;;  %v1097_v23 = vld [vmem:[%s1735_s4 + $0x60] sm:$0xff]  ;;  %v1116_v26 = vld [vmem:[%s1735_s4 + $0x58] sm:$0xff] }
   0x9   :  { %172 = vmatpush.msra.mxu3 %v998_v7  ;;  %123 = vmatpush.msra.mxu2 %v1055_v16  ;;  %v1102_v24 = vld [vmem:[%s1733_s3 + $0x60] sm:$0xff]  ;;  %v1107_v25 = vld [vmem:[%s1733_s3 + $0x68] sm:$0xff]  ;;  %v1121_v27 = vld [vmem:[%s1733_s3 + $0x50] sm:$0xff] }
   0xa   :  { %57 = vmatpush.msra.mxu0 %v1012_v9  ;;  %77 = vmatpush.msra.mxu1 %v1017_v10  ;;  %v1126_v28 = vld [vmem:[%s1733_s3 + $0x58] sm:$0xff]  ;;  %v1135_v29 = vld [vmem:[%s1735_s4 + $0x50] sm:$0xff]  ;;  %v1140_v30 = vld [vmem:[%s1733_s3 + $0x40] sm:$0xff] }
   0xb   :  { %173 = vmatpush.msra.mxu3 %v1012_v9  ;;  %124 = vmatpush.msra.mxu2 %v1060_v17  ;;  %v1145_v31 = vld [vmem:[%s1733_s3 + $0x48] sm:$0xff]  ;;  %v1159_v33 = vld [vmem:[%s1733_s3 + $0x30] sm:$0xff]  ;;  %v1164_v34 = vld [vmem:[%s1733_s3 + $0x38] sm:$0xff] }
   0xc   :  { %58 = vmatpush.msra.mxu0 %v1026_v11  ;;  %78 = vmatpush.msra.mxu1 %v1031_v12  ;;  %v1154_v32 = vld [vmem:[%s1735_s4 + $0x48] sm:$0xff]  ;;  %1751 = vst [vmem:[#allocation2_spill] sm:$0xff] %v1164_v34  ;;  %v1173_v35 = vld [vmem:[%s1735_s4 + $0x40] sm:$0xff]  ;;  %v1192_v38 = vld [vmem:[%s1735_s4 + $0x38] sm:$0xff] }
   0xd   :  { %174 = vmatpush.msra.mxu3 %v1026_v11  ;;  %125 = vmatpush.msra.mxu2 %v1078_v20  ;;  %v1178_v36 = vld [vmem:[%s1733_s3 + $0x20] sm:$0xff]  ;;  %v1183_v37 = vld [vmem:[%s1733_s3 + $0x28] sm:$0xff]  ;;  %v1197_v39 = vld [vmem:[%s1733_s3 + $0x10] sm:$0xff] }
   0xe   :  { %59 = vmatpush.msra.mxu0 %v1039_v13  ;;  %79 = vmatpush.msra.mxu1 %v1044_v14  ;;  %1752 = vst [vmem:[#allocation3_spill] sm:$0xff] %v1183_v37  ;;  %v1202_v40 = vld [vmem:[%s1733_s3 + $0x18] sm:$0xff]  ;;  %v1211_v41 = vld [vmem:[%s1735_s4 + $0x30] sm:$0xff]  ;;  %v1216_v42 = vld [vmem:[%s1733_s3] sm:$0xff] }
   0xf   :  { %175 = vmatpush.msra.mxu3 %v1039_v13  ;;  %126 = vmatpush.msra.mxu2 %v1097_v23  ;;  %1753 = vst [vmem:[#allocation4_spill] sm:$0xff] %v1202_v40  ;;  %v1221_v43 = vld [vmem:[%s1733_s3 + $0x8] sm:$0xff]  ;;  %v1239_v46 = vld [vmem:[%s1735_s4 + $0x20] sm:$0xff]  ;;  %v1304_v47 = vld [vmem:[%s1735_s4 + $0x18] sm:$0xff] }
  0x10   :  { %60 = vmatpush.msra.mxu0 %v1065_v18  ;;  %80 = vmatpush.msra.mxu1 %v1070_v19  ;;  %1754 = vst [vmem:[#allocation5_spill] sm:$0xff] %v1221_v43  ;;  %v1231_v44 = vld [vmem:[%s1735_s4 + $0x28] sm:$0xff]  ;;  %v1311_v48 = vld [vmem:[%s1735_s4 + $0x10] sm:$0xff]  ;;  %v1327_v50 = vld [vmem:[%s1735_s4] sm:$0xff] }
  0x11   :  { %176 = vmatpush.msra.mxu3 %v1065_v18  ;;  %127 = vmatpush.msra.mxu2 %v1116_v26  ;;  %v1319_v49 = vld [vmem:[%s1735_s4 + $0x8] sm:$0xff]  ;;  %v1352_v51 = vld [vmem:[%s1736_s1] ss:$0 sm:$0xff] }
  0x12   :  { %61 = vmatpush.msra.mxu0 %v1083_v21  ;;  %81 = vmatpush.msra.mxu1 %v1088_v22 }
  0x13   :  { %177 = vmatpush.msra.mxu3 %v1083_v21  ;;  %128 = vmatpush.msra.mxu2 %v1135_v29 }
  0x14   :  { %62 = vmatpush.msra.mxu0 %v1102_v24  ;;  %82 = vmatpush.msra.mxu1 %v1107_v25 }
  0x15   :  { %178 = vmatpush.msra.mxu3 %v1102_v24  ;;  %129 = vmatpush.msra.mxu2 %v1154_v32 }
  0x16   :  { %63 = vmatpush.msra.mxu0 %v1121_v27  ;;  %83 = vmatpush.msra.mxu1 %v1126_v28 }
  0x17   :  { %179 = vmatpush.msra.mxu3 %v1121_v27  ;;  %130 = vmatpush.msra.mxu2 %v1173_v35 }
  0x18   :  { %64 = vmatpush.msra.mxu0 %v1140_v30  ;;  %84 = vmatpush.msra.mxu1 %v1145_v31 }
  0x19   :  { %180 = vmatpush.msra.mxu3 %v1140_v30  ;;  %131 = vmatpush.msra.mxu2 %v1192_v38 }
  0x1a   :  { %65 = vmatpush.msra.mxu0 %v1159_v33  ;;  %85 = vmatpush.msra.mxu1 %v1164_v34 }
  0x1b   :  { %181 = vmatpush.msra.mxu3 %v1159_v33  ;;  %132 = vmatpush.msra.mxu2 %v1211_v41 }
  0x1c   :  { %66 = vmatpush.msra.mxu0 %v1178_v36  ;;  %86 = vmatpush.msra.mxu1 %v1183_v37 }
  0x1d   :  { %182 = vmatpush.msra.mxu3 %v1178_v36  ;;  %133 = vmatpush.msra.mxu2 %v1231_v44 }
  0x1e   :  { %67 = vmatpush.msra.mxu0 %v1197_v39  ;;  %87 = vmatpush.msra.mxu1 %v1202_v40 }
  0x1f   :  { %183 = vmatpush.msra.mxu3 %v1197_v39  ;;  %134 = vmatpush.msra.mxu2 %v1239_v46 }
  0x20   :  { %68 = vmatpush.msra.mxu0 %v1216_v42  ;;  %88 = vmatpush.msra.mxu1 %v1221_v43 }
  0x21   :  { %69 = vmatmul.f32.vlgmr.msra.gmra.mxu0 %v927_v45  ;;  %89 = vmatmul.f32.vlgmr.msra.gmra.mxu1 %v927_v45 }
  0x22   :  { %189 = vmatpush.msrb.mxu0 %v967_v1  ;;  %219 = vmatpush.msrb.mxu1 %v1055_v16 }
  0x23   :  { %184 = vmatpush.msra.mxu3 %v1216_v42  ;;  %135 = vmatpush.msra.mxu2 %v1304_v47 }
  0x24   :  { %190 = vmatpush.msrb.mxu0 %v979_v3  ;;  %220 = vmatpush.msrb.mxu1 %v1060_v17 }
  0x25   :  { %282 = vmatpush.msrb.mxu3 %v967_v1  ;;  %136 = vmatpush.msra.mxu2 %v1311_v48 }
  0x26   :  { %191 = vmatpush.msrb.mxu0 %v989_v5  ;;  %221 = vmatpush.msrb.mxu1 %v1078_v20 }
  0x27   :  { %283 = vmatpush.msrb.mxu3 %v979_v3  ;;  %137 = vmatpush.msra.mxu2 %v1319_v49 }
  0x28   :  { %192 = vmatpush.msrb.mxu0 %v1003_v8  ;;  %222 = vmatpush.msrb.mxu1 %v1097_v23 }
  0x29   :  { %284 = vmatpush.msrb.mxu3 %v989_v5  ;;  %138 = vmatpush.msra.mxu2 %v1327_v50 }
  0x2a   :  { %193 = vmatpush.msrb.mxu0 %v1017_v10  ;;  %223 = vmatpush.msrb.mxu1 %v1116_v26 }
  0x2b   :  { %285 = vmatpush.msrb.mxu3 %v1003_v8  ;;  %262 = vmatpush.msrb.mxu2 %v962_v0 }
  0x2c   :  { %194 = vmatpush.msrb.mxu0 %v1031_v12  ;;  %224 = vmatpush.msrb.mxu1 %v1135_v29 }
  0x2d   :  { %286 = vmatpush.msrb.mxu3 %v1017_v10  ;;  %263 = vmatpush.msrb.mxu2 %v972_v2 }
  0x2e   :  { %195 = vmatpush.msrb.mxu0 %v1044_v14  ;;  %225 = vmatpush.msrb.mxu1 %v1154_v32 }
  0x2f   :  { %287 = vmatpush.msrb.mxu3 %v1031_v12  ;;  %264 = vmatpush.msrb.mxu2 %v984_v4 }
  0x30   :  { %196 = vmatpush.msrb.mxu0 %v1070_v19  ;;  %226 = vmatpush.msrb.mxu1 %v1173_v35 }
  0x31   :  { %288 = vmatpush.msrb.mxu3 %v1044_v14  ;;  %265 = vmatpush.msrb.mxu2 %v998_v7 }
  0x32   :  { %197 = vmatpush.msrb.mxu0 %v1088_v22  ;;  %227 = vmatpush.msrb.mxu1 %v1192_v38 }
  0x33   :  { %289 = vmatpush.msrb.mxu3 %v1070_v19  ;;  %266 = vmatpush.msrb.mxu2 %v1012_v9 }
  0x34   :  { %198 = vmatpush.msrb.mxu0 %v1107_v25  ;;  %228 = vmatpush.msrb.mxu1 %v1211_v41 }
  0x35   :  { %290 = vmatpush.msrb.mxu3 %v1088_v22  ;;  %267 = vmatpush.msrb.mxu2 %v1026_v11 }
  0x36   :  { %199 = vmatpush.msrb.mxu0 %v1126_v28  ;;  %229 = vmatpush.msrb.mxu1 %v1231_v44 }
  0x37   :  { %291 = vmatpush.msrb.mxu3 %v1107_v25  ;;  %268 = vmatpush.msrb.mxu2 %v1039_v13 }
  0x38   :  { %200 = vmatpush.msrb.mxu0 %v1145_v31  ;;  %230 = vmatpush.msrb.mxu1 %v1239_v46 }
  0x39   :  { %292 = vmatpush.msrb.mxu3 %v1126_v28  ;;  %269 = vmatpush.msrb.mxu2 %v1065_v18 }
  0x3a   :  { %201 = vmatpush.msrb.mxu0 %v1164_v34  ;;  %231 = vmatpush.msrb.mxu1 %v1304_v47 }
  0x3b   :  { %293 = vmatpush.msrb.mxu3 %v1145_v31  ;;  %270 = vmatpush.msrb.mxu2 %v1083_v21 }
  0x3c   :  { %202 = vmatpush.msrb.mxu0 %v1183_v37  ;;  %232 = vmatpush.msrb.mxu1 %v1311_v48 }
  0x3d   :  { %294 = vmatpush.msrb.mxu3 %v1164_v34  ;;  %271 = vmatpush.msrb.mxu2 %v1102_v24 }
  0x3e   :  { %203 = vmatpush.msrb.mxu0 %v1202_v40  ;;  %233 = vmatpush.msrb.mxu1 %v1319_v49 }
  0x3f   :  { %295 = vmatpush.msrb.mxu3 %v1183_v37  ;;  %272 = vmatpush.msrb.mxu2 %v1121_v27 }
  0x40   :  { %204 = vmatpush.msrb.mxu0 %v1221_v43  ;;  %234 = vmatpush.msrb.mxu1 %v1327_v50 }
  0x41   :  { %296 = vmatpush.msrb.mxu3 %v1202_v40  ;;  %273 = vmatpush.msrb.mxu2 %v1140_v30 }
  0x42   :  { %312 = vmatpush.msra.mxu0 %v1055_v16  ;;  %355 = vmatpush.msra.mxu1 %v962_v0 }
  0x43   :  { %297 = vmatpush.msrb.mxu3 %v1221_v43  ;;  %274 = vmatpush.msrb.mxu2 %v1159_v33 }
  0x44   :  { %313 = vmatpush.msra.mxu0 %v1060_v17  ;;  %356 = vmatpush.msra.mxu1 %v972_v2 }
  0x45   :  { %275 = vmatpush.msrb.mxu2 %v1178_v36  ;;  %834 = vset.pattern.permute.xlu0 %v1743_v59 }
  0x46   :  { %314 = vmatpush.msra.mxu0 %v1078_v20  ;;  %357 = vmatpush.msra.mxu1 %v984_v4 }
  0x47   :  { %276 = vmatpush.msrb.mxu2 %v1197_v39 }
  0x48   :  { %315 = vmatpush.msra.mxu0 %v1097_v23  ;;  %358 = vmatpush.msra.mxu1 %v998_v7 }
  0x49   :  { %277 = vmatpush.msrb.mxu2 %v1216_v42 }
  0x4a   :  { %316 = vmatpush.msra.mxu0 %v1116_v26  ;;  %359 = vmatpush.msra.mxu1 %v1012_v9 }
  0x4c   :  { %317 = vmatpush.msra.mxu0 %v1135_v29  ;;  %360 = vmatpush.msra.mxu1 %v1026_v11 }
  0x4e   :  { %318 = vmatpush.msra.mxu0 %v1154_v32  ;;  %361 = vmatpush.msra.mxu1 %v1039_v13 }
  0x50   :  { %319 = vmatpush.msra.mxu0 %v1173_v35  ;;  %362 = vmatpush.msra.mxu1 %v1065_v18 }
  0x52   :  { %320 = vmatpush.msra.mxu0 %v1192_v38  ;;  %363 = vmatpush.msra.mxu1 %v1083_v21 }
  0x54   :  { %321 = vmatpush.msra.mxu0 %v1211_v41  ;;  %364 = vmatpush.msra.mxu1 %v1102_v24 }
  0x56   :  { %322 = vmatpush.msra.mxu0 %v1231_v44  ;;  %365 = vmatpush.msra.mxu1 %v1121_v27 }
  0x58   :  { %323 = vmatpush.msra.mxu0 %v1239_v46  ;;  %366 = vmatpush.msra.mxu1 %v1140_v30 }
  0x5a   :  { %324 = vmatpush.msra.mxu0 %v1304_v47  ;;  %367 = vmatpush.msra.mxu1 %v1159_v33 }
  0x5c   :  { %325 = vmatpush.msra.mxu0 %v1311_v48  ;;  %368 = vmatpush.msra.mxu1 %v1178_v36 }
  0x5e   :  { %326 = vmatpush.msra.mxu0 %v1319_v49  ;;  %369 = vmatpush.msra.mxu1 %v1197_v39 }
  0x60   :  { %327 = vmatpush.msra.mxu0 %v1327_v50  ;;  %370 = vmatpush.msra.mxu1 %v1216_v42 }
  0x79   :  { %v97_v52 = vpop.permute.xlu0 %96 }
  0x7a   :  { %v102_v53 = vmul.f32 %v1352_v51, %v97_v52 }
  0x7c   :  { %v103_v54 = vmax.f32 %v102_v53, 0.0  ;;  %v1392_v53 = vld [vmem:[%s1737_s2] ss:$0 sm:$0xff] }
  0x9e   :  { %v70_v55 = vpop.f32.mrf.mxu0 }
  0x9f   :  { %v104_v56 = vmax.f32 %v70_v55, 0.0  ;;  %v158_v55 = vmul.f32 %v1392_v53, %v97_v52 }
  0xa1   :  { %v105_v57 = vadd.f32 %v104_v56, %v103_v54  ;;  %v823_v54 = vld [vmem:[%s1734_s0 + $0x8] sm:$0xff]  ;;  %v90_v56 = vpop.f32.mrf.mxu1 }
  0xa2   :  { %211 = vperm.xlu1 %835, %v823_v54  }
  0xa3   :  { %v106_v58 = vmul.f32 %v105_v57, %v105_v57  ;;  %v159_v57 = vadd.f32 %v158_v55, %v90_v56 }
  0xa5   :  { %139 = vmatmul.f32.vlgmr.msra.gmra.mxu2 %v106_v58  ;;  %v160_v58 = vmul.f32 0.5, %v159_v57 }
  0xa6   :  { %375 = vmatpush.msra.mxu2 %v967_v1 }
  0xa8   :  { %376 = vmatpush.msra.mxu2 %v979_v3 }
  0xaa   :  { %377 = vmatpush.msra.mxu2 %v989_v5  ;;  %836 = vset.pattern.permute.xlu1 %v1743_v59 }
  0xac   :  { %378 = vmatpush.msra.mxu2 %v1003_v8 }
  0xae   :  { %379 = vmatpush.msra.mxu2 %v1017_v10 }
  0xb0   :  { %380 = vmatpush.msra.mxu2 %v1031_v12 }
  0xb2   :  { %381 = vmatpush.msra.mxu2 %v1044_v14 }
  0xb4   :  { %382 = vmatpush.msra.mxu2 %v1070_v19 }
  0xb6   :  { %383 = vmatpush.msra.mxu2 %v1088_v22 }
  0xb8   :  { %384 = vmatpush.msra.mxu2 %v1107_v25 }
  0xba   :  { %385 = vmatpush.msra.mxu2 %v1126_v28 }
  0xbc   :  { %386 = vmatpush.msra.mxu2 %v1145_v31 }
  0xbe   :  { %387 = vmatpush.msra.mxu2 %v1164_v34 }
  0xc0   :  { %388 = vmatpush.msra.mxu2 %v1183_v37 }
  0xc2   :  { %389 = vmatpush.msra.mxu2 %v1202_v40 }
  0xc4   :  { %390 = vmatpush.msra.mxu2 %v1221_v43 }
 0x128   :  { %v140_v60 = vpop.f32.mrf.mxu2 }
 0x129   :  { %v143_v61 = vadd.f32 1e-06, %v140_v60 }
 0x12b   :  { %848 = vrcp.f32 %v143_v61 }
 0x12c   :  { %850 = vtanh.f32 %v160_v58  ;;  %v1755_v58 = vld [vmem:[#allocation5_spill] sm:$0xff] }
 0x131   :  { %v849_v62 = vpop.eup %848 }
 0x132   :  { %v145_v63 = vmul.f32 %v849_v62, %v143_v61 }
 0x134   :  { %v146_v15 = vsub.f32 2.0, %v145_v63 }
 0x136   :  { %v147_v45 = vmul.f32 %v849_v62, %v146_v15  ;;  %v851_v62 = vpop.eup %850 }
 0x137   :  { %v162_v15 = vmul.f32 0.5, %v851_v62 }
 0x138   :  { %150 = vperm.xlu0 %834, %v147_v45  }
 0x139   :  { %v163_v45 = vadd.f32 0.5, %v162_v15 }
 0x140   :  { %840 = vset.pattern.permute.xlu0 %v1739_v6 }
 0x1aa   :  { %v151_v61 = vpop.permute.xlu0 %150 }
 0x1ab   :  { %v153_v63 = vmul.f32 %v151_v61, %v140_v60 }
 0x1ad   :  { %852 = vtanh.f32 %v153_v63 }
 0x1b3   :  { %v853_v6 = vpop.eup %852 }
 0x1b4   :  { %v1399_v43 = vmul.f32 %v853_v6, %v163_v45  ;;  %v212_v6 = vpop.permute.xlu1 %211 }
 0x1b5   :  { %v214_v52 = vmul.f32 %v1352_v51, %v212_v6 }
 0x1b6   :  { %185 = vmatmul.f32.vlgmr.msra.gmra.mxu3 %v1399_v43  ;;  %205 = vmatmul.f32.vlgmr.msrb.gmra.mxu0 %v1399_v43 }
 0x1b7   :  { %405 = vmatpush.msra.mxu3 %v1055_v16  ;;  %448 = vmatpush.msrb.mxu0 %v962_v0  ;;  %v215_v60 = vmax.f32 %v214_v52, 0.0 }
 0x1b9   :  { %406 = vmatpush.msra.mxu3 %v1060_v17  ;;  %449 = vmatpush.msrb.mxu0 %v972_v2 }
 0x1bb   :  { %407 = vmatpush.msra.mxu3 %v1078_v20  ;;  %450 = vmatpush.msrb.mxu0 %v984_v4 }
 0x1bd   :  { %408 = vmatpush.msra.mxu3 %v1097_v23  ;;  %451 = vmatpush.msrb.mxu0 %v998_v7 }
 0x1bf   :  { %409 = vmatpush.msra.mxu3 %v1116_v26  ;;  %452 = vmatpush.msrb.mxu0 %v1012_v9 }
 0x1c1   :  { %410 = vmatpush.msra.mxu3 %v1135_v29  ;;  %453 = vmatpush.msrb.mxu0 %v1026_v11 }
 0x1c3   :  { %411 = vmatpush.msra.mxu3 %v1154_v32  ;;  %454 = vmatpush.msrb.mxu0 %v1039_v13 }
 0x1c5   :  { %412 = vmatpush.msra.mxu3 %v1173_v35  ;;  %455 = vmatpush.msrb.mxu0 %v1065_v18 }
 0x1c7   :  { %413 = vmatpush.msra.mxu3 %v1192_v38  ;;  %456 = vmatpush.msrb.mxu0 %v1083_v21 }
 0x1c9   :  { %414 = vmatpush.msra.mxu3 %v1211_v41  ;;  %457 = vmatpush.msrb.mxu0 %v1102_v24 }
 0x1cb   :  { %415 = vmatpush.msra.mxu3 %v1231_v44  ;;  %458 = vmatpush.msrb.mxu0 %v1121_v27 }
 0x1cd   :  { %416 = vmatpush.msra.mxu3 %v1239_v46  ;;  %459 = vmatpush.msrb.mxu0 %v1140_v30 }
 0x1cf   :  { %417 = vmatpush.msra.mxu3 %v1304_v47  ;;  %460 = vmatpush.msrb.mxu0 %v1159_v33 }
 0x1d1   :  { %418 = vmatpush.msra.mxu3 %v1311_v48  ;;  %461 = vmatpush.msrb.mxu0 %v1178_v36 }
 0x1d3   :  { %419 = vmatpush.msra.mxu3 %v1319_v49  ;;  %462 = vmatpush.msrb.mxu0 %v1197_v39 }
 0x1d5   :  { %420 = vmatpush.msra.mxu3 %v1327_v50  ;;  %463 = vmatpush.msrb.mxu0 %v1216_v42 }
 0x239   :  { %v186_v54 = vpop.f32.mrf.mxu3 }
 0x23a   :  { %v216_v55 = vmax.f32 %v186_v54, 0.0  ;;  %v824_v54 = vld [vmem:[%s1734_s0 + $0x10] sm:$0xff] }
 0x23b   :  { %304 = vperm.xlu2 %837, %v824_v54   ;;  %v1758_v54 = vld [vmem:[#allocation2_spill] sm:$0xff] }
 0x23c   :  { %v217_v56 = vadd.f32 %v216_v55, %v215_v60  ;;  %v1756_v60 = vmov 0   ;;  %v250_v55 = vmul.f32 %v1392_v53, %v212_v6 }
 0x23e   :  { %v218_v57 = vmul.f32 %v217_v56, %v217_v56  ;;  %v206_v56 = vpop.f32.mrf.mxu0 }
 0x240   :  { %235 = vmatmul.f32.vlgmr.msrb.gmra.mxu1 %v218_v57  ;;  %v251_v57 = vadd.f32 %v250_v55, %v206_v56  ;;  %v1759_v55 = vld [vmem:[#allocation3_spill] sm:$0xff]  ;;  %v1760_v56 = vld [vmem:[#allocation4_spill] sm:$0xff] }
 0x241   :  { %468 = vmatpush.msrb.mxu1 %v967_v1 }
 0x242   :  { %v252_v59 = vmul.f32 0.5, %v251_v57  ;;  %v1761_v57 = vld [vmem:[#allocation5_spill] sm:$0xff] }
 0x243   :  { %469 = vmatpush.msrb.mxu1 %v979_v3 }
 0x245   :  { %470 = vmatpush.msrb.mxu1 %v989_v5 }
 0x247   :  { %471 = vmatpush.msrb.mxu1 %v1003_v8 }
 0x249   :  { %472 = vmatpush.msrb.mxu1 %v1017_v10 }
 0x24b   :  { %473 = vmatpush.msrb.mxu1 %v1031_v12 }
 0x24d   :  { %474 = vmatpush.msrb.mxu1 %v1044_v14 }
 0x24f   :  { %475 = vmatpush.msrb.mxu1 %v1070_v19 }
 0x251   :  { %476 = vmatpush.msrb.mxu1 %v1088_v22 }
 0x253   :  { %477 = vmatpush.msrb.mxu1 %v1107_v25 }
 0x255   :  { %478 = vmatpush.msrb.mxu1 %v1126_v28 }
 0x257   :  { %479 = vmatpush.msrb.mxu1 %v1145_v31 }
 0x259   :  { %480 = vmatpush.msrb.mxu1 %v1164_v34 }
 0x25b   :  { %481 = vmatpush.msrb.mxu1 %v1183_v37 }
 0x25d   :  { %482 = vmatpush.msrb.mxu1 %v1202_v40 }
 0x25f   :  { %483 = vmatpush.msrb.mxu1 %v1755_v58  ;;  %v1757_v58 = vmov 32  }
 0x260   :  { %838 = vset.pattern.permute.xlu2 %v1757_v58 }
 0x2bd   :  { %v236_v61 = vpop.f32.mrf.mxu1 }
 0x2be   :  { %v239_v62 = vadd.f32 1e-06, %v236_v61 }
 0x2c0   :  { %854 = vrcp.f32 %v239_v62 }
 0x2c1   :  { %856 = vtanh.f32 %v252_v59 }
 0x2c6   :  { %v855_v63 = vpop.eup %854 }
 0x2c7   :  { %v241_v15 = vmul.f32 %v855_v63, %v239_v62 }
 0x2c9   :  { %v242_v45 = vsub.f32 2.0, %v241_v15  ;;  %v857_v15 = vpop.eup %856 }
 0x2cb   :  { %v243_v52 = vmul.f32 %v855_v63, %v242_v45  ;;  %v254_v63 = vmul.f32 0.5, %v857_v15 }
 0x2cd   :  { %246 = vperm.xlu1 %836, %v243_v52   ;;  %v255_v52 = vadd.f32 0.5, %v254_v63 }
 0x2d5   :  { %839 = vset.pattern.permute.xlu1 %v1756_v60 }
 0x33f   :  { %v247_v40 = vpop.permute.xlu1 %246 }
 0x340   :  { %v249_v62 = vmul.f32 %v247_v40, %v236_v61 }
 0x342   :  { %858 = vtanh.f32 %v249_v62 }
 0x348   :  { %v859_v45 = vpop.eup %858 }
 0x349   :  { %v257_v60 = vsub.f32 %v859_v45, %v1399_v43 }
 0x34b   :  { %v258_v37 = vmul.f32 %v257_v60, %v255_v52 }
 0x34d   :  { %v1460_v34 = vadd.f32 %v258_v37, %v1399_v43  ;;  %v305_v37 = vpop.permute.xlu2 %304 }
 0x34e   :  { %v307_v40 = vmul.f32 %v1352_v51, %v305_v37 }
 0x34f   :  { %278 = vmatmul.f32.vlgmr.msrb.gmra.mxu2 %v1460_v34  ;;  %298 = vmatmul.f32.vlgmr.msrb.gmra.mxu3 %v1460_v34 }
 0x350   :  { %498 = vmatpush.msrb.mxu2 %v1055_v16  ;;  %541 = vmatpush.msrb.mxu3 %v962_v0  ;;  %v308_v43 = vmax.f32 %v307_v40, 0.0 }
 0x352   :  { %499 = vmatpush.msrb.mxu2 %v1060_v17  ;;  %542 = vmatpush.msrb.mxu3 %v972_v2 }
 0x354   :  { %500 = vmatpush.msrb.mxu2 %v1078_v20  ;;  %543 = vmatpush.msrb.mxu3 %v984_v4 }
 0x356   :  { %501 = vmatpush.msrb.mxu2 %v1097_v23  ;;  %544 = vmatpush.msrb.mxu3 %v998_v7 }
 0x358   :  { %502 = vmatpush.msrb.mxu2 %v1116_v26  ;;  %545 = vmatpush.msrb.mxu3 %v1012_v9 }
 0x35a   :  { %503 = vmatpush.msrb.mxu2 %v1135_v29  ;;  %546 = vmatpush.msrb.mxu3 %v1026_v11 }
 0x35c   :  { %504 = vmatpush.msrb.mxu2 %v1154_v32  ;;  %547 = vmatpush.msrb.mxu3 %v1039_v13 }
 0x35e   :  { %505 = vmatpush.msrb.mxu2 %v1173_v35  ;;  %548 = vmatpush.msrb.mxu3 %v1065_v18 }
 0x360   :  { %506 = vmatpush.msrb.mxu2 %v1192_v38  ;;  %549 = vmatpush.msrb.mxu3 %v1083_v21 }
 0x362   :  { %507 = vmatpush.msrb.mxu2 %v1211_v41  ;;  %550 = vmatpush.msrb.mxu3 %v1102_v24 }
 0x364   :  { %508 = vmatpush.msrb.mxu2 %v1231_v44  ;;  %551 = vmatpush.msrb.mxu3 %v1121_v27 }
 0x366   :  { %509 = vmatpush.msrb.mxu2 %v1239_v46  ;;  %552 = vmatpush.msrb.mxu3 %v1140_v30 }
 0x368   :  { %510 = vmatpush.msrb.mxu2 %v1304_v47  ;;  %553 = vmatpush.msrb.mxu3 %v1159_v33 }
 0x36a   :  { %511 = vmatpush.msrb.mxu2 %v1311_v48  ;;  %554 = vmatpush.msrb.mxu3 %v1178_v36 }
 0x36c   :  { %512 = vmatpush.msrb.mxu2 %v1319_v49  ;;  %555 = vmatpush.msrb.mxu3 %v1197_v39 }
 0x36e   :  { %513 = vmatpush.msrb.mxu2 %v1327_v50  ;;  %556 = vmatpush.msrb.mxu3 %v1216_v42 }
 0x3d2   :  { %v279_v59 = vpop.f32.mrf.mxu2 }
 0x3d3   :  { %v309_v6 = vmax.f32 %v279_v59, 0.0  ;;  %v343_v59 = vmul.f32 %v1392_v53, %v305_v37 }
 0x3d5   :  { %v310_v61 = vadd.f32 %v309_v6, %v308_v43  ;;  %v825_v43 = vld [vmem:[%s1734_s0 + $0x18] sm:$0xff]  ;;  %v299_v6 = vpop.f32.mrf.mxu3 }
 0x3d6   :  { %397 = vperm.xlu1 %839, %v825_v43  }
 0x3d7   :  { %v311_v60 = vmul.f32 %v310_v61, %v310_v61  ;;  %v344_v61 = vadd.f32 %v343_v59, %v299_v6 }
 0x3d9   :  { %328 = vmatmul.f32.vlgmr.msra.gmra.mxu0 %v311_v60  ;;  %v345_v60 = vmul.f32 0.5, %v344_v61 }
 0x3da   :  { %561 = vmatpush.msra.mxu0 %v967_v1 }
 0x3dc   :  { %562 = vmatpush.msra.mxu0 %v979_v3 }
 0x3de   :  { %563 = vmatpush.msra.mxu0 %v989_v5  ;;  %841 = vset.pattern.permute.xlu1 %v1757_v58 }
 0x3e0   :  { %564 = vmatpush.msra.mxu0 %v1003_v8 }
 0x3e2   :  { %565 = vmatpush.msra.mxu0 %v1017_v10 }
 0x3e4   :  { %566 = vmatpush.msra.mxu0 %v1031_v12 }
 0x3e6   :  { %567 = vmatpush.msra.mxu0 %v1044_v14 }
 0x3e8   :  { %568 = vmatpush.msra.mxu0 %v1070_v19 }
 0x3ea   :  { %569 = vmatpush.msra.mxu0 %v1088_v22 }
 0x3ec   :  { %570 = vmatpush.msra.mxu0 %v1107_v25 }
 0x3ee   :  { %571 = vmatpush.msra.mxu0 %v1126_v28 }
 0x3f0   :  { %572 = vmatpush.msra.mxu0 %v1145_v31 }
 0x3f2   :  { %573 = vmatpush.msra.mxu0 %v1758_v54 }
 0x3f4   :  { %574 = vmatpush.msra.mxu0 %v1759_v55 }
 0x3f6   :  { %575 = vmatpush.msra.mxu0 %v1760_v56 }
 0x3f8   :  { %576 = vmatpush.msra.mxu0 %v1761_v57 }
 0x456   :  { %v329_v62 = vpop.f32.mrf.mxu0 }
 0x457   :  { %v332_v15 = vadd.f32 1e-06, %v329_v62 }
 0x459   :  { %860 = vrcp.f32 %v332_v15 }
 0x45a   :  { %862 = vtanh.f32 %v345_v60 }
 0x45f   :  { %v861_v63 = vpop.eup %860 }
 0x460   :  { %v334_v45 = vmul.f32 %v861_v63, %v332_v15  ;;  %v863_v55 = vpop.eup %862 }
 0x461   :  { %v347_v15 = vmul.f32 0.5, %v863_v55 }
 0x462   :  { %v335_v52 = vsub.f32 2.0, %v334_v45 }
 0x463   :  { %v348_v45 = vadd.f32 0.5, %v347_v15 }
 0x464   :  { %v336_v40 = vmul.f32 %v861_v63, %v335_v52 }
 0x466   :  { %339 = vperm.xlu2 %838, %v336_v40  }
 0x4c0   :  { %v340_v57 = vpop.permute.xlu2 %339 }
 0x4c1   :  { %v342_v56 = vmul.f32 %v340_v57, %v329_v62 }
 0x4c3   :  { %864 = vtanh.f32 %v342_v56 }
 0x4c9   :  { %v865_v63 = vpop.eup %864 }
 0x4ca   :  { %v350_v52 = vsub.f32 %v865_v63, %v1460_v34 }
 0x4cc   :  { %v351_v40 = vmul.f32 %v350_v52, %v348_v45  ;;  %v896_v52 = vld [vmem:[%s1733_s3 + $0xf0] sm:$0xff] }
 0x4ce   :  { %v1520_v54 = vadd.f32 %v351_v40, %v1460_v34  ;;  %v897_v40 = vld [vmem:[%s1733_s3 + $0xe0] sm:$0xff] }
 0x4d0   :  { %371 = vmatmul.f32.vlgmr.msra.gmra.mxu1 %v1520_v54  ;;  %391 = vmatmul.f32.vlgmr.msra.gmra.mxu2 %v1520_v54 }
 0x4d1   :  { %591 = vmatpush.msra.mxu1 %v1055_v16  ;;  %634 = vmatpush.msra.mxu2 %v962_v0  ;;  %v398_v0 = vpop.permute.xlu1 %397 }
 0x4d2   :  { %v436_v55 = vmul.f32 %v1392_v53, %v398_v0 }
 0x4d3   :  { %592 = vmatpush.msra.mxu1 %v1060_v17  ;;  %635 = vmatpush.msra.mxu2 %v972_v2  ;;  %v400_v2 = vmul.f32 %v1352_v51, %v398_v0  ;;  %v913_v0 = vld [vmem:[%s1733_s3 + $0x58] sm:$0xff] }
 0x4d5   :  { %593 = vmatpush.msra.mxu1 %v1078_v20  ;;  %636 = vmatpush.msra.mxu2 %v984_v4  ;;  %v401_v4 = vmax.f32 %v400_v2, 0.0 }
 0x4d7   :  { %594 = vmatpush.msra.mxu1 %v1097_v23  ;;  %637 = vmatpush.msra.mxu2 %v998_v7 }
 0x4d9   :  { %595 = vmatpush.msra.mxu1 %v1116_v26  ;;  %638 = vmatpush.msra.mxu2 %v1012_v9 }
 0x4db   :  { %596 = vmatpush.msra.mxu1 %v1135_v29  ;;  %639 = vmatpush.msra.mxu2 %v1026_v11 }
 0x4dd   :  { %597 = vmatpush.msra.mxu1 %v1154_v32  ;;  %640 = vmatpush.msra.mxu2 %v1039_v13 }
 0x4df   :  { %598 = vmatpush.msra.mxu1 %v1173_v35  ;;  %641 = vmatpush.msra.mxu2 %v1065_v18 }
 0x4e1   :  { %599 = vmatpush.msra.mxu1 %v1192_v38  ;;  %642 = vmatpush.msra.mxu2 %v1083_v21 }
 0x4e3   :  { %600 = vmatpush.msra.mxu1 %v1211_v41  ;;  %643 = vmatpush.msra.mxu2 %v1102_v24 }
 0x4e5   :  { %601 = vmatpush.msra.mxu1 %v1231_v44  ;;  %644 = vmatpush.msra.mxu2 %v1121_v27 }
 0x4e7   :  { %602 = vmatpush.msra.mxu1 %v1239_v46  ;;  %645 = vmatpush.msra.mxu2 %v1140_v30 }
 0x4e9   :  { %603 = vmatpush.msra.mxu1 %v1304_v47  ;;  %646 = vmatpush.msra.mxu2 %v1159_v33 }
 0x4eb   :  { %604 = vmatpush.msra.mxu1 %v1311_v48  ;;  %647 = vmatpush.msra.mxu2 %v1178_v36 }
 0x4ed   :  { %605 = vmatpush.msra.mxu1 %v1319_v49  ;;  %648 = vmatpush.msra.mxu2 %v1197_v39 }
 0x4ef   :  { %606 = vmatpush.msra.mxu1 %v1327_v50  ;;  %649 = vmatpush.msra.mxu2 %v1216_v42 }
 0x54d   :  { %v372_v7 = vpop.f32.mrf.mxu1 }
 0x54e   :  { %v402_v9 = vmax.f32 %v372_v7, 0.0 }
 0x550   :  { %v403_v11 = vadd.f32 %v402_v9, %v401_v4 }
 0x552   :  { %v404_v13 = vmul.f32 %v403_v11, %v403_v11 }
 0x553   :  { %v392_v37 = vpop.f32.mrf.mxu2 }
 0x554   :  { %421 = vmatmul.f32.vlgmr.msra.gmra.mxu3 %v404_v13  ;;  %v437_v56 = vadd.f32 %v436_v55, %v392_v37 }
 0x555   :  { %654 = vmatpush.msra.mxu3 %v967_v1  ;;  %v1762_v1 = vld [vmem:[#allocation2_spill] sm:$0xff] }
 0x556   :  { %v438_v57 = vmul.f32 0.5, %v437_v56 }
 0x557   :  { %655 = vmatpush.msra.mxu3 %v979_v3  ;;  %v1763_v3 = vld [vmem:[#allocation3_spill] sm:$0xff] }
 0x559   :  { %656 = vmatpush.msra.mxu3 %v989_v5  ;;  %v1764_v5 = vld [vmem:[#allocation4_spill] sm:$0xff] }
 0x55b   :  { %657 = vmatpush.msra.mxu3 %v1003_v8  ;;  %v1765_v8 = vld [vmem:[#allocation5_spill] sm:$0xff] }
 0x55d   :  { %658 = vmatpush.msra.mxu3 %v1017_v10 }
 0x55f   :  { %659 = vmatpush.msra.mxu3 %v1031_v12 }
 0x561   :  { %660 = vmatpush.msra.mxu3 %v1044_v14 }
 0x563   :  { %661 = vmatpush.msra.mxu3 %v1070_v19 }
 0x565   :  { %662 = vmatpush.msra.mxu3 %v1088_v22 }
 0x567   :  { %663 = vmatpush.msra.mxu3 %v1107_v25  ;;  %v1766_v25 = vmov 0  }
 0x569   :  { %664 = vmatpush.msra.mxu3 %v1126_v28  ;;  %v826_v28 = vld [vmem:[%s1734_s0 + $0x20] sm:$0xff] }
 0x56a   :  { %490 = vperm.xlu0 %840, %v826_v28  }
 0x56b   :  { %665 = vmatpush.msra.mxu3 %v1145_v31 }
 0x56d   :  { %666 = vmatpush.msra.mxu3 %v1762_v1 }
 0x56f   :  { %667 = vmatpush.msra.mxu3 %v1763_v3 }
 0x571   :  { %668 = vmatpush.msra.mxu3 %v1764_v5 }
 0x572   :  { %843 = vset.pattern.permute.xlu0 %v1757_v58 }
 0x573   :  { %669 = vmatpush.msra.mxu3 %v1765_v8 }
 0x5d7   :  { %v422_v10 = vpop.f32.mrf.mxu3 }
 0x5d8   :  { %v425_v12 = vadd.f32 1e-06, %v422_v10 }
 0x5da   :  { %866 = vrcp.f32 %v425_v12 }
 0x5db   :  { %868 = vtanh.f32 %v438_v57  ;;  %v914_v57 = vld [vmem:[%s1735_s4 + $0x78] sm:$0xff] }
 0x5e0   :  { %v867_v14 = vpop.eup %866 }
 0x5e1   :  { %v427_v19 = vmul.f32 %v867_v14, %v425_v12  ;;  %v869_v59 = vpop.eup %868 }
 0x5e2   :  { %v440_v6 = vmul.f32 0.5, %v869_v59  ;;  %v918_v59 = vld [vmem:[%s1735_s4 + $0x58] sm:$0xff] }
 0x5e3   :  { %v428_v22 = vsub.f32 2.0, %v427_v19 }
 0x5e4   :  { %v441_v60 = vadd.f32 0.5, %v440_v6  ;;  %v919_v6 = vld [vmem:[%s1735_s4 + $0x50] sm:$0xff] }
 0x5e5   :  { %v429_v34 = vmul.f32 %v867_v14, %v428_v22 }
 0x5e7   :  { %432 = vperm.xlu2 %838, %v429_v34  }
 0x5ef   :  { %842 = vset.pattern.permute.xlu2 %v1766_v25 }
 0x641   :  { %v433_v62 = vpop.permute.xlu2 %432 }
 0x642   :  { %v435_v43 = vmul.f32 %v433_v62, %v422_v10  ;;  %v916_v62 = vld [vmem:[%s1735_s4 + $0x68] sm:$0xff] }
 0x644   :  { %870 = vtanh.f32 %v435_v43  ;;  %v917_v43 = vld [vmem:[%s1735_s4 + $0x60] sm:$0xff] }
 0x64a   :  { %v871_v61 = vpop.eup %870 }
 0x64b   :  { %v443_v15 = vsub.f32 %v871_v61, %v1520_v54  ;;  %v920_v61 = vld [vmem:[%s1735_s4 + $0x48] sm:$0xff] }
 0x64d   :  { %v444_v63 = vmul.f32 %v443_v15, %v441_v60  ;;  %v921_v60 = vld [vmem:[%s1735_s4 + $0x40] sm:$0xff]  ;;  %v922_v15 = vld [vmem:[%s1735_s4 + $0x38] sm:$0xff] }
 0x64f   :  { %v1581_v45 = vadd.f32 %v444_v63, %v1520_v54  ;;  %v898_v54 = vld [vmem:[%s1733_s3 + $0xd0] sm:$0xff] }
 0x650   :  { %v923_v63 = vld [vmem:[%s1735_s4 + $0x30] sm:$0xff] }
 0x651   :  { %464 = vmatmul.f32.vlgmr.msrb.gmra.mxu0 %v1581_v45  ;;  %484 = vmatmul.f32.vlgmr.msrb.gmra.mxu1 %v1581_v45 }
 0x652   :  { %684 = vmatpush.msrb.mxu0 %v1055_v16  ;;  %727 = vmatpush.msrb.mxu1 %v896_v52  ;;  %v899_v16 = vld [vmem:[%s1733_s3 + $0xc0] sm:$0xff] }
 0x653   :  { %v925_v52 = vld [vmem:[%s1735_s4 + $0x20] sm:$0xff] }
 0x654   :  { %685 = vmatpush.msrb.mxu0 %v1060_v17  ;;  %728 = vmatpush.msrb.mxu1 %v897_v40  ;;  %v900_v17 = vld [vmem:[%s1733_s3 + $0xb0] sm:$0xff] }
 0x656   :  { %686 = vmatpush.msrb.mxu0 %v1078_v20  ;;  %729 = vmatpush.msrb.mxu1 %v898_v54  ;;  %v901_v20 = vld [vmem:[%s1733_s3 + $0xa0] sm:$0xff] }
 0x658   :  { %687 = vmatpush.msrb.mxu0 %v1097_v23  ;;  %730 = vmatpush.msrb.mxu1 %v899_v16  ;;  %v902_v23 = vld [vmem:[%s1733_s3 + $0x90] sm:$0xff] }
 0x65a   :  { %688 = vmatpush.msrb.mxu0 %v1116_v26  ;;  %731 = vmatpush.msrb.mxu1 %v900_v17 }
 0x65c   :  { %689 = vmatpush.msrb.mxu0 %v1135_v29  ;;  %732 = vmatpush.msrb.mxu1 %v901_v20 }
 0x65e   :  { %690 = vmatpush.msrb.mxu0 %v1154_v32  ;;  %733 = vmatpush.msrb.mxu1 %v902_v23  ;;  %v903_v32 = vld [vmem:[%s1733_s3 + $0xf8] sm:$0xff] }
 0x660   :  { %691 = vmatpush.msrb.mxu0 %v1173_v35  ;;  %734 = vmatpush.msrb.mxu1 %v1065_v18  ;;  %v491_v18 = vpop.permute.xlu0 %490  ;;  %v905_v35 = vld [vmem:[%s1733_s3 + $0xd8] sm:$0xff] }
 0x662   :  { %692 = vmatpush.msrb.mxu0 %v1192_v38  ;;  %735 = vmatpush.msrb.mxu1 %v1083_v21  ;;  %v493_v21 = vmul.f32 %v1352_v51, %v491_v18  ;;  %v907_v38 = vld [vmem:[%s1733_s3 + $0xb8] sm:$0xff] }
 0x664   :  { %693 = vmatpush.msrb.mxu0 %v1211_v41  ;;  %736 = vmatpush.msrb.mxu1 %v1102_v24  ;;  %v494_v24 = vmax.f32 %v493_v21, 0.0  ;;  %v909_v41 = vld [vmem:[%s1733_s3 + $0x98] sm:$0xff] }
 0x666   :  { %694 = vmatpush.msrb.mxu0 %v1231_v44  ;;  %737 = vmatpush.msrb.mxu1 %v1121_v27  ;;  %v911_v44 = vld [vmem:[%s1733_s3 + $0x78] sm:$0xff] }
 0x668   :  { %695 = vmatpush.msrb.mxu0 %v1239_v46  ;;  %738 = vmatpush.msrb.mxu1 %v1140_v30  ;;  %v912_v46 = vld [vmem:[%s1733_s3 + $0x68] sm:$0xff] }
 0x66a   :  { %696 = vmatpush.msrb.mxu0 %v1304_v47  ;;  %739 = vmatpush.msrb.mxu1 %v1159_v33  ;;  %v904_v33 = vld [vmem:[%s1733_s3 + $0xe8] sm:$0xff] }
 0x66c   :  { %697 = vmatpush.msrb.mxu0 %v1311_v48  ;;  %740 = vmatpush.msrb.mxu1 %v1178_v36  ;;  %v906_v36 = vld [vmem:[%s1733_s3 + $0xc8] sm:$0xff] }
 0x66e   :  { %698 = vmatpush.msrb.mxu0 %v1319_v49  ;;  %741 = vmatpush.msrb.mxu1 %v1197_v39  ;;  %v908_v39 = vld [vmem:[%s1733_s3 + $0xa8] sm:$0xff] }
 0x670   :  { %699 = vmatpush.msrb.mxu0 %v1327_v50  ;;  %742 = vmatpush.msrb.mxu1 %v1216_v42  ;;  %v910_v42 = vld [vmem:[%s1733_s3 + $0x88] sm:$0xff] }
 0x6ce   :  { %v465_v26 = vpop.f32.mrf.mxu0 }
 0x6cf   :  { %v495_v27 = vmax.f32 %v465_v26, 0.0 }
 0x6d1   :  { %v496_v29 = vadd.f32 %v495_v27, %v494_v24 }
 0x6d3   :  { %v497_v30 = vmul.f32 %v496_v29, %v496_v29 }
 0x6d5   :  { %514 = vmatmul.f32.vlgmr.msrb.gmra.mxu2 %v497_v30 }
 0x6d6   :  { %747 = vmatpush.msrb.mxu2 %v903_v32 }
 0x6d8   :  { %748 = vmatpush.msrb.mxu2 %v904_v33 }
 0x6da   :  { %749 = vmatpush.msrb.mxu2 %v905_v35 }
 0x6dc   :  { %750 = vmatpush.msrb.mxu2 %v906_v36 }
 0x6de   :  { %751 = vmatpush.msrb.mxu2 %v907_v38 }
 0x6e0   :  { %752 = vmatpush.msrb.mxu2 %v908_v39 }
 0x6e2   :  { %753 = vmatpush.msrb.mxu2 %v909_v41 }
 0x6e4   :  { %754 = vmatpush.msrb.mxu2 %v910_v42 }
 0x6e6   :  { %755 = vmatpush.msrb.mxu2 %v911_v44 }
 0x6e8   :  { %756 = vmatpush.msrb.mxu2 %v912_v46 }
 0x6ea   :  { %757 = vmatpush.msrb.mxu2 %v913_v0 }
 0x6ec   :  { %758 = vmatpush.msrb.mxu2 %v1145_v31  ;;  %v827_v31 = vld [vmem:[%s1734_s0 + $0x28] sm:$0xff] }
 0x6ed   :  { %583 = vperm.xlu2 %842, %v827_v31  }
 0x6ee   :  { %759 = vmatpush.msrb.mxu2 %v1762_v1  ;;  %v529_v1 = vmul.f32 %v1392_v53, %v491_v18 }
 0x6f0   :  { %760 = vmatpush.msrb.mxu2 %v1763_v3  ;;  %v485_v3 = vpop.f32.mrf.mxu1 }
 0x6f1   :  { %v530_v10 = vadd.f32 %v529_v1, %v485_v3 }
 0x6f2   :  { %761 = vmatpush.msrb.mxu2 %v1764_v5  ;;  %v828_v5 = vld [vmem:[%s1734_s0 + $0x30] sm:$0xff] }
 0x6f4   :  { %762 = vmatpush.msrb.mxu2 %v1765_v8  ;;  %v531_v8 = vmul.f32 0.5, %v530_v10 }
 0x6f5   :  { %676 = vperm.xlu2 %842, %v828_v5   ;;  %v829_v5 = vld [vmem:[%s1734_s0 + $0x38] sm:$0xff] }
 0x6fd   :  { %845 = vset.pattern.permute.xlu2 %v1757_v58  ;;  %v915_v58 = vld [vmem:[%s1735_s4 + $0x70] sm:$0xff] }
 0x747   :  { %v584_v40 = vpop.permute.xlu2 %583 }
 0x748   :  { %v586_v54 = vmul.f32 %v1352_v51, %v584_v40 }
 0x74a   :  { %v587_v16 = vmax.f32 %v586_v54, 0.0 }
 0x74f   :  { %v677_v46 = vpop.permute.xlu2 %676 }
 0x758   :  { %v515_v2 = vpop.f32.mrf.mxu2 }
 0x759   :  { %v518_v4 = vadd.f32 1e-06, %v515_v2 }
 0x75b   :  { %872 = vrcp.f32 %v518_v4 }
 0x75c   :  { %874 = vtanh.f32 %v531_v8 }
 0x761   :  { %v873_v7 = vpop.eup %872 }
 0x762   :  { %v520_v9 = vmul.f32 %v873_v7, %v518_v4  ;;  %v875_v19 = vpop.eup %874 }
 0x763   :  { %v533_v22 = vmul.f32 0.5, %v875_v19 }
 0x764   :  { %v521_v11 = vsub.f32 2.0, %v520_v9 }
 0x765   :  { %v534_v28 = vadd.f32 0.5, %v533_v22 }
 0x766   :  { %v522_v13 = vmul.f32 %v873_v7, %v521_v11 }
 0x768   :  { %525 = vperm.xlu1 %841, %v522_v13  }
 0x7da   :  { %v526_v12 = vpop.permute.xlu1 %525 }
 0x7db   :  { %v528_v14 = vmul.f32 %v526_v12, %v515_v2  ;;  %v715_v12 = vmul.f32 %v1392_v53, %v677_v46 }
 0x7dd   :  { %876 = vtanh.f32 %v528_v14 }
 0x7e3   :  { %v877_v34 = vpop.eup %876 }
 0x7e4   :  { %v536_v37 = vsub.f32 %v877_v34, %v1581_v45 }
 0x7e6   :  { %v537_v55 = vmul.f32 %v536_v37, %v534_v28 }
 0x7e8   :  { %v538_v56 = vadd.f32 %v537_v55, %v1581_v45  ;;  %v924_v45 = vld [vmem:[%s1735_s4 + $0x28] sm:$0xff] }
 0x7ea   :  { %557 = vmatmul.f32.vlgmr.msrb.gmra.mxu3 %v538_v56  ;;  %577 = vmatmul.f32.vlgmr.msra.gmra.mxu0 %v538_v56 }
 0x7eb   :  { %777 = vmatpush.msrb.mxu3 %v914_v57 }
 0x7ed   :  { %778 = vmatpush.msrb.mxu3 %v915_v58 }
 0x7ef   :  { %779 = vmatpush.msrb.mxu3 %v916_v62 }
 0x7f1   :  { %780 = vmatpush.msrb.mxu3 %v917_v43 }
 0x7f3   :  { %781 = vmatpush.msrb.mxu3 %v918_v59 }
 0x7f5   :  { %782 = vmatpush.msrb.mxu3 %v919_v6 }
 0x7f7   :  { %783 = vmatpush.msrb.mxu3 %v920_v61 }
 0x7f9   :  { %784 = vmatpush.msrb.mxu3 %v921_v60 }
 0x7fb   :  { %785 = vmatpush.msrb.mxu3 %v922_v15 }
 0x7fd   :  { %786 = vmatpush.msrb.mxu3 %v923_v63 }
 0x7ff   :  { %787 = vmatpush.msrb.mxu3 %v924_v45 }
 0x801   :  { %788 = vmatpush.msrb.mxu3 %v925_v52 }
 0x803   :  { %789 = vmatpush.msrb.mxu3 %v1304_v47 }
 0x805   :  { %790 = vmatpush.msrb.mxu3 %v1311_v48 }
 0x807   :  { %791 = vmatpush.msrb.mxu3 %v1319_v49  ;;  %v622_v49 = vmul.f32 %v1392_v53, %v584_v40 }
 0x809   :  { %792 = vmatpush.msrb.mxu3 %v1327_v50 }
 0x867   :  { %v578_v50 = vpop.f32.mrf.mxu0 }
 0x868   :  { %v623_v29 = vadd.f32 %v622_v49, %v578_v50 }
 0x86a   :  { %v624_v30 = vmul.f32 0.5, %v623_v29 }
 0x86d   :  { %v558_v17 = vpop.f32.mrf.mxu3 }
 0x86e   :  { %v588_v20 = vmax.f32 %v558_v17, 0.0 }
 0x870   :  { %v589_v23 = vadd.f32 %v588_v20, %v587_v16 }
 0x872   :  { %v590_v18 = vmul.f32 %v589_v23, %v589_v23 }
 0x874   :  { %607 = vmatmul.f32.vlgmr.msra.gmra.mxu1 %v590_v18 }
 0x8f1   :  { %v608_v21 = vpop.f32.mrf.mxu1 }
 0x8f2   :  { %v611_v24 = vadd.f32 1e-06, %v608_v21 }
 0x8f4   :  { %878 = vrcp.f32 %v611_v24 }
 0x8f5   :  { %880 = vtanh.f32 %v624_v30 }
 0x8fa   :  { %v879_v26 = vpop.eup %878 }
 0x8fb   :  { %v613_v47 = vmul.f32 %v879_v26, %v611_v24  ;;  %v881_v35 = vpop.eup %880 }
 0x8fc   :  { %v626_v36 = vmul.f32 0.5, %v881_v35 }
 0x8fd   :  { %v614_v27 = vsub.f32 2.0, %v613_v47 }
 0x8fe   :  { %v627_v39 = vadd.f32 0.5, %v626_v36 }
 0x8ff   :  { %v615_v48 = vmul.f32 %v879_v26, %v614_v27 }
 0x901   :  { %618 = vperm.xlu1 %841, %v615_v48  }
 0x909   :  { %844 = vset.pattern.permute.xlu1 %v1766_v25  ;;  %v679_v25 = vmul.f32 %v1352_v51, %v677_v46 }
 0x90a   :  { %769 = vperm.xlu1 %844, %v829_v5  }
 0x90b   :  { %v680_v2 = vmax.f32 %v679_v25, 0.0 }
 0x973   :  { %v619_v32 = vpop.permute.xlu1 %618 }
 0x974   :  { %v621_v33 = vmul.f32 %v619_v32, %v608_v21 }
 0x976   :  { %882 = vtanh.f32 %v621_v33 }
 0x97c   :  { %v883_v38 = vpop.eup %882  ;;  %v770_v43 = vpop.permute.xlu1 %769 }
 0x97d   :  { %v629_v41 = vsub.f32 %v883_v38, %v538_v56  ;;  %v772_v59 = vmul.f32 %v1352_v51, %v770_v43  ;;  %v808_v23 = vmul.f32 %v1392_v53, %v770_v43 }
 0x97f   :  { %v630_v42 = vmul.f32 %v629_v41, %v627_v39  ;;  %v773_v6 = vmax.f32 %v772_v59, 0.0 }
 0x981   :  { %v631_v44 = vadd.f32 %v630_v42, %v538_v56 }
 0x983   :  { %650 = vmatmul.f32.vlgmr.msra.gmra.mxu2 %v631_v44  ;;  %670 = vmatmul.f32.vlgmr.msra.gmra.mxu3 %v631_v44 }
 0xa06   :  { %v651_v0 = vpop.f32.mrf.mxu2  ;;  %v671_v8 = vpop.f32.mrf.mxu3 }
 0xa07   :  { %v681_v4 = vmax.f32 %v651_v0, 0.0  ;;  %v716_v14 = vadd.f32 %v715_v12, %v671_v8 }
 0xa09   :  { %v682_v7 = vadd.f32 %v681_v4, %v680_v2  ;;  %v717_v19 = vmul.f32 0.5, %v716_v14 }
 0xa0b   :  { %v683_v9 = vmul.f32 %v682_v7, %v682_v7 }
 0xa0d   :  { %700 = vmatmul.f32.vlgmr.msrb.gmra.mxu0 %v683_v9 }
 0xa8a   :  { %v701_v11 = vpop.f32.mrf.mxu0 }
 0xa8b   :  { %v704_v13 = vadd.f32 1e-06, %v701_v11 }
 0xa8d   :  { %884 = vrcp.f32 %v704_v13 }
 0xa8e   :  { %886 = vtanh.f32 %v717_v19 }
 0xa93   :  { %v885_v31 = vpop.eup %884 }
 0xa94   :  { %v706_v1 = vmul.f32 %v885_v31, %v704_v13  ;;  %v887_v28 = vpop.eup %886 }
 0xa95   :  { %v719_v37 = vmul.f32 0.5, %v887_v28 }
 0xa96   :  { %v707_v3 = vsub.f32 2.0, %v706_v1 }
 0xa97   :  { %v720_v56 = vadd.f32 0.5, %v719_v37 }
 0xa98   :  { %v708_v10 = vmul.f32 %v885_v31, %v707_v3 }
 0xa9a   :  { %711 = vperm.xlu0 %843, %v708_v10  }
 0xb0c   :  { %v712_v22 = vpop.permute.xlu0 %711 }
 0xb0d   :  { %v714_v34 = vmul.f32 %v712_v22, %v701_v11 }
 0xb0f   :  { %888 = vtanh.f32 %v714_v34 }
 0xb15   :  { %v889_v55 = vpop.eup %888 }
 0xb16   :  { %v722_v57 = vsub.f32 %v889_v55, %v631_v44 }
 0xb18   :  { %v723_v58 = vmul.f32 %v722_v57, %v720_v56 }
 0xb1a   :  { %v724_v62 = vadd.f32 %v723_v58, %v631_v44 }
 0xb1c   :  { %743 = vmatmul.f32.vlgmr.msrb.gmra.mxu1 %v724_v62  ;;  %763 = vmatmul.f32.vlgmr.msrb.gmra.mxu2 %v724_v62 }
 0xb99   :  { %v744_v61 = vpop.f32.mrf.mxu1 }
 0xb9a   :  { %v774_v60 = vmax.f32 %v744_v61, 0.0 }
 0xb9c   :  { %v775_v15 = vadd.f32 %v774_v60, %v773_v6 }
 0xb9e   :  { %v776_v63 = vmul.f32 %v775_v15, %v775_v15 }
 0xb9f   :  { %v764_v20 = vpop.f32.mrf.mxu2 }
 0xba0   :  { %793 = vmatmul.f32.vlgmr.msrb.gmra.mxu3 %v776_v63  ;;  %v809_v18 = vadd.f32 %v808_v23, %v764_v20 }
 0xba2   :  { %v810_v21 = vmul.f32 0.5, %v809_v18 }
 0xc23   :  { %v794_v45 = vpop.f32.mrf.mxu3 }
 0xc24   :  { %v797_v52 = vadd.f32 1e-06, %v794_v45 }
 0xc26   :  { %890 = vrcp.f32 %v797_v52 }
 0xc27   :  { %892 = vtanh.f32 %v810_v21 }
 0xc2c   :  { %v891_v40 = vpop.eup %890 }
 0xc2d   :  { %v799_v54 = vmul.f32 %v891_v40, %v797_v52  ;;  %v893_v26 = vpop.eup %892 }
 0xc2e   :  { %v812_v47 = vmul.f32 0.5, %v893_v26 }
 0xc2f   :  { %v800_v16 = vsub.f32 2.0, %v799_v54 }
 0xc30   :  { %v813_v48 = vadd.f32 0.5, %v812_v47 }
 0xc31   :  { %v801_v17 = vmul.f32 %v891_v40, %v800_v16 }
 0xc33   :  { %804 = vperm.xlu2 %845, %v801_v17  }
 0xc8d   :  { %v805_v51 = vpop.permute.xlu2 %804 }
 0xc8e   :  { %v807_v24 = vmul.f32 %v805_v51, %v794_v45 }
 0xc90   :  { %894 = vtanh.f32 %v807_v24 }
 0xc96   :  { %v895_v27 = vpop.eup %894 }
 0xc97   :  { %v815_v49 = vsub.f32 %v895_v27, %v724_v62 }
 0xc99   :  { %v816_v50 = vmul.f32 %v815_v49, %v813_v48 }
 0xc9b   :  { %v817_v29 = vadd.f32 %v816_v50, %v724_v62 }
 0xc9d   :  { %818 = vst [vmem:[%s1738_s5] sm:$0xff] %v817_v29 }

</bundles_post_ra>
